<compile_context>
chip_gen: v5e
topology: v5e:2x2
jax: 0.10.0
libtpu: 0.0.40
codegen_flags: <defaults>
</compile_context>

<pallas_src>
import functools
import math

import jax
import jax.numpy as jnp
from jax.experimental import pallas as pl
from jax.experimental.pallas import tpu as pltpu

# ---- small synthetic RoBERTa config ----
VOCAB = 100
MAX_POS = 64
HIDDEN = 32
N_HEADS = 2
HEAD_DIM = HIDDEN // N_HEADS
INTERMEDIATE = 64
N_LAYERS = 2
EPS = 1e-5
PAD_IDX = 1          # RoBERTa padding_idx; real positions start at PAD_IDX + 1
NEG_INF = -1e9


# ----------------------------- fused Pallas kernel -----------------------------
def _fused_roberta_kernel(
    x_ref,        # (B*S, H)   embeddings (word+pos+type), pre-LN
    mask_ref,     # (B*S, B*S) block-diagonal additive attention mask
    vecs_ref,     # (4, 1, H)  [emb_ln_g, emb_ln_b, pooler_b, reg_w^T]
    wqkv_ref,     # (L, H, 3H) fused QKV weights, Q columns pre-scaled by 1/sqrt(Dh)
    whh_ref,      # (L+1, H, H) per-layer attn-output weights + pooler weight at index L
    wi_ref,       # (L, H, I)
    wo2_ref,      # (L, I, H)
    bqi_ref,      # (L, 1, 3H+I) [bqkv (Q part pre-scaled) | bi]
    lnb_ref,      # (L*6, 1, H) per layer: [bo, ln1_g, ln1_b, bo2, ln2_g, ln2_b]
    regb_ref,     # (1, 1)
    logits_ref,   # (1, B) lane-major output
    *, batch, seq,
):
    """Single grid step: the whole batch's (B*S, H) activations live in vregs/VMEM."""

    def layer_norm(v, g, b):
        mu = jnp.mean(v, axis=-1, keepdims=True)
        var = jnp.mean(jnp.square(v - mu), axis=-1, keepdims=True)
        return (v - mu) * jax.lax.rsqrt(var + EPS) * g + b

    x = layer_norm(x_ref[...], vecs_ref[0], vecs_ref[1])          # (B*S, H)
    m_add = mask_ref[...]                                          # (B*S, B*S), hoisted once

    for l in range(N_LAYERS):                                      # static unroll (2 layers)
        bqi = bqi_ref[l]                                           # (1, 3H+I)
        # Fused QKV projection: one MXU matmul; attention scale already folded into Q cols.
        qkv = (jnp.dot(x, wqkv_ref[l], preferred_element_type=jnp.float32)
               + bqi[:, :3 * HIDDEN])

        wo_l = whh_ref[l]                                          # (H, H), loaded once/layer
        attn = lnb_ref[l * 6 + 0]                                  # bo (1, H); broadcasts below
        for h in range(N_HEADS):                                   # static unroll (2 heads)
            c = h * HEAD_DIM
            q_h = qkv[:, c:c + HEAD_DIM]
            k_h = qkv[:, HIDDEN + c:HIDDEN + c + HEAD_DIM]
            v_h = qkv[:, 2 * HIDDEN + c:2 * HIDDEN + c + HEAD_DIM]
            # scores = q @ k^T (contraction on head_dim, no explicit transpose)
            s = jax.lax.dot_general(q_h, k_h, (((1,), (1,)), ((), ())),
                                    preferred_element_type=jnp.float32)
            s = s + m_add                                          # padding + cross-seq mask
            s = s - jnp.max(s, axis=-1, keepdims=True)
            p = jnp.exp(s)
            p = p * pl.reciprocal(jnp.sum(p, axis=-1, keepdims=True), approx=True)
            head = jnp.dot(p, v_h, preferred_element_type=jnp.float32)     # (B*S, Dh)
            # Fold head into output projection (no head concat / lane relayout):
            attn = attn + jnp.dot(head, wo_l[c:c + HEAD_DIM, :],
                                  preferred_element_type=jnp.float32)

        x = layer_norm(attn + x, lnb_ref[l * 6 + 1], lnb_ref[l * 6 + 2])

        ffn = (jnp.dot(x, wi_ref[l], preferred_element_type=jnp.float32)
               + bqi[:, 3 * HIDDEN:])
        ffn = jax.nn.gelu(ffn, approximate=True)                   # tanh GELU (EUP slot)
        ffn = (jnp.dot(ffn, wo2_ref[l], preferred_element_type=jnp.float32)
               + lnb_ref[l * 6 + 3])
        x = layer_norm(ffn + x, lnb_ref[l * 6 + 4], lnb_ref[l * 6 + 5])

    # Pooler on the CLS rows (rows 0, S, ..., (B-1)*S) + regressor, fused in the same kernel.
    cls = jnp.concatenate([x[b * seq:b * seq + 1, :] for b in range(batch)], axis=0)  # (B, H)
    pooled = jnp.tanh(jnp.dot(cls, whh_ref[N_LAYERS], preferred_element_type=jnp.float32)
                      + vecs_ref[2])
    # Regressor as (1,H) x (B,H) contraction on H -> lane-major (1, B), single store.
    logits_ref[...] = (jax.lax.dot_general(vecs_ref[3], pooled, (((1,), (1,)), ((), ())),
                                           preferred_element_type=jnp.float32)
                       + regb_ref[...])


def _block(shape):
    """Full-array block, same block for the single grid step."""
    n = len(shape)
    return pl.BlockSpec(shape, lambda *_g, _n=n: (0,) * _n)


def roberta_fused_pallas(packed, x_emb, mask_add, B, S):
    args = (x_emb, mask_add, packed["vecs"], packed["wqkv"], packed["w_hh"],
            packed["wi"], packed["wo2"], packed["bqi"], packed["lnb"], packed["reg_b"])
    logits = pl.pallas_call(
        functools.partial(_fused_roberta_kernel, batch=B, seq=S),
        out_shape=jax.ShapeDtypeStruct((1, B), jnp.float32),
        grid=(1,),                                          # single step: whole batch fused
        in_specs=[_block(a.shape) for a in args],
        out_specs=_block((1, B)),
        compiler_params=pltpu.CompilerParams(
            dimension_semantics=("arbitrary",)),            # no megacore split at this size
    )(*args)
    return logits.reshape(B, 1)


# ----------------------------- parameter init / packing -----------------------------
def init_params(key):
    def norm(k, shape, scale=0.02):
        return scale * jax.random.normal(k, shape, jnp.float32)

    counter = [0]

    def nk():
        counter[0] += 1
        return jax.random.fold_in(key, counter[0])

    L, H, I = N_LAYERS, HIDDEN, INTERMEDIATE
    return {
        "word_emb": norm(nk(), (VOCAB, H)),
        "pos_emb": norm(nk(), (MAX_POS, H)),
        "type_emb": norm(nk(), (1, H)),
        "emb_ln_g": jnp.ones((1, H), jnp.float32),
        "emb_ln_b": jnp.zeros((1, H), jnp.float32),
        # per-layer weights stacked on a leading layer axis (indexed statically in-kernel)
        "wqkv": norm(nk(), (L, H, 3 * H)),
        "bqkv": jnp.zeros((L, 1, 3 * H), jnp.float32),
        "wo": norm(nk(), (L, H, H)),
        "bo": jnp.zeros((L, 1, H), jnp.float32),
        "ln1_g": jnp.ones((L, 1, H), jnp.float32),
        "ln1_b": jnp.zeros((L, 1, H), jnp.float32),
        "wi": norm(nk(), (L, H, I)),
        "bi": jnp.zeros((L, 1, I), jnp.float32),
        "wo2": norm(nk(), (L, I, H)),
        "bo2": jnp.zeros((L, 1, H), jnp.float32),
        "ln2_g": jnp.ones((L, 1, H), jnp.float32),
        "ln2_b": jnp.zeros((L, 1, H), jnp.float32),
        "pooler_w": norm(nk(), (H, H)),
        "pooler_b": jnp.zeros((1, H), jnp.float32),
        "reg_w": norm(nk(), (H, 1)),
        "reg_b": jnp.zeros((1, 1), jnp.float32),
    }


def pack_params(params):
    """Consolidate ~20 tiny weights into a few slabs; fold attention scale into Q cols."""
    scale = 1.0 / math.sqrt(HEAD_DIM)
    col_scale = jnp.concatenate(
        [jnp.full((HIDDEN,), scale, jnp.float32), jnp.ones((2 * HIDDEN,), jnp.float32)])
    lnb = jnp.concatenate(
        [params["bo"], params["ln1_g"], params["ln1_b"],
         params["bo2"], params["ln2_g"], params["ln2_b"]], axis=1)       # (L, 6, H)
    return {
        "vecs": jnp.stack([params["emb_ln_g"], params["emb_ln_b"],
                           params["pooler_b"], params["reg_w"].T], axis=0),   # (4, 1, H)
        "wqkv": params["wqkv"] * col_scale,                                    # (L, H, 3H)
        "w_hh": jnp.concatenate([params["wo"], params["pooler_w"][None]], 0),  # (L+1, H, H)
        "wi": params["wi"],                                                    # (L, H, I)
        "wo2": params["wo2"],                                                  # (L, I, H)
        "bqi": jnp.concatenate([params["bqkv"] * col_scale, params["bi"]], -1),  # (L,1,3H+I)
        "lnb": lnb.reshape(N_LAYERS * 6, 1, HIDDEN),                           # (L*6, 1, H)
        "reg_b": params["reg_b"],                                              # (1, 1)
    }


# ----------------------------- forward pass -----------------------------
def roberta_regression_forward(params, input_ids, attention_mask=None, labels=None):
    B, S = input_ids.shape
    if attention_mask is None:
        attention_mask = jnp.ones((B, S), jnp.float32)
    mask = attention_mask.astype(jnp.float32)

    # HF RoBERTa position ids: cumsum over (input_ids != padding_idx), pads pinned to pad_idx.
    pad_mask = (input_ids != PAD_IDX).astype(jnp.int32)
    position_ids = jnp.cumsum(pad_mask, axis=1) * pad_mask + PAD_IDX

    # Embedding gathers are glue in plain JAX; everything downstream is one Pallas kernel.
    x = (params["word_emb"][input_ids]
         + params["pos_emb"][position_ids]
         + params["type_emb"][0][None, None, :])
    x_emb = x.reshape(B * S, HIDDEN).astype(jnp.float32)

    # Block-diagonal additive mask: -1e9 on padded keys and on cross-sequence pairs.
    idx = jnp.arange(B * S)
    same_seq = (idx[:, None] // S) == (idx[None, :] // S)
    key_ok = mask.reshape(B * S)[None, :] > 0.5
    mask_add = jnp.where(same_seq & key_ok, 0.0, NEG_INF).astype(jnp.float32)

    packed = pack_params(params)
    logits = roberta_fused_pallas(packed, x_emb, mask_add, B, S)

    if labels is not None:
        loss = jnp.mean(jnp.abs(jnp.squeeze(logits) - labels))   # L1 loss (plain JAX glue)
        return {"loss": loss, "logits": logits}
    return {"logits": logits}


# ----------------------------- pure-JAX reference (correctness check) -----------------------------
def _forward_reference(params, input_ids, attention_mask):
    B, S = input_ids.shape
    mask = attention_mask.astype(jnp.float32)
    pad_mask = (input_ids != PAD_IDX).astype(jnp.int32)
    position_ids = jnp.cumsum(pad_mask, axis=1) * pad_mask + PAD_IDX
    x = (params["word_emb"][input_ids]
         + params["pos_emb"][position_ids]
         + params["type_emb"][0][None, None, :]).reshape(B * S, HIDDEN)

    def ln(v, g, b):
        mu = jnp.mean(v, axis=-1, keepdims=True)
        var = jnp.mean(jnp.square(v - mu), axis=-1, keepdims=True)
        return (v - mu) * jax.lax.rsqrt(var + EPS) * g + b

    with jax.default_matmul_precision("float32"):
        x = ln(x, params["emb_ln_g"], params["emb_ln_b"])
        mask_add = (1.0 - mask) * NEG_INF
        for l in range(N_LAYERS):
            qkv = x @ params["wqkv"][l] + params["bqkv"][l]
            q, k, v = jnp.split(qkv, 3, axis=-1)

            def heads(t):
                return t.reshape(B, S, N_HEADS, HEAD_DIM).transpose(0, 2, 1, 3)

            qh, kh, vh = heads(q), heads(k), heads(v)
            s = jnp.einsum("bhqd,bhkd->bhqk", qh, kh) / math.sqrt(HEAD_DIM)
            s = s + mask_add[:, None, None, :]
            p = jax.nn.softmax(s, axis=-1)
            ctx = jnp.einsum("bhqk,bhkd->bhqd", p, vh)
            ctx = ctx.transpose(0, 2, 1, 3).reshape(B * S, HIDDEN)
            attn = ctx @ params["wo"][l] + params["bo"][l]
            x = ln(attn + x, params["ln1_g"][l], params["ln1_b"][l])
            h = jax.nn.gelu(x @ params["wi"][l] + params["bi"][l], approximate=False)
            ffn = h @ params["wo2"][l] + params["bo2"][l]
            x = ln(ffn + x, params["ln2_g"][l], params["ln2_b"][l])
        cls = x.reshape(B, S, HIDDEN)[:, 0, :]
        pooled = jnp.tanh(cls @ params["pooler_w"] + params["pooler_b"])
        return pooled @ params["reg_w"] + params["reg_b"]


# ----------------------------- main -----------------------------
if __name__ == "__main__":
    key = jax.random.PRNGKey(0)
    B, S = 2, 8
    params = init_params(jax.random.fold_in(key, 123))
    input_ids = jax.random.randint(jax.random.fold_in(key, 1), (B, S), 0, VOCAB, jnp.int32)
    attention_mask = jnp.concatenate(
        [jnp.ones((B, S - 2), jnp.float32), jnp.zeros((B, 2), jnp.float32)], axis=1)
    labels = jax.random.normal(jax.random.fold_in(key, 2), (B,), jnp.float32)

    out = roberta_regression_forward(params, input_ids, attention_mask, labels)
    logits = jax.block_until_ready(out["logits"])
    jax.block_until_ready(out["loss"])
    assert logits.shape == (B, 1)

    ref = _forward_reference(params, input_ids, attention_mask)
    assert jnp.allclose(logits, ref, atol=5e-3, rtol=5e-2), (logits, ref)
    print("KERNEL_OK")
</pallas_src>

<mosaic_0001>
module attributes {stable_mosaic.version = 11 : i64} {
  func.func @_fused_roberta_kernel(%arg0: i32, %arg1: memref<16x32xf32, #tpu.memory_space<vmem>>, %arg2: memref<16x16xf32, #tpu.memory_space<vmem>>, %arg3: memref<4x1x32xf32, #tpu.memory_space<vmem>>, %arg4: memref<2x32x96xf32, #tpu.memory_space<vmem>>, %arg5: memref<3x32x32xf32, #tpu.memory_space<vmem>>, %arg6: memref<2x32x64xf32, #tpu.memory_space<vmem>>, %arg7: memref<2x64x32xf32, #tpu.memory_space<vmem>>, %arg8: memref<2x1x160xf32, #tpu.memory_space<vmem>>, %arg9: memref<12x1x32xf32, #tpu.memory_space<vmem>>, %arg10: memref<1x1xf32, #tpu.memory_space<vmem>>, %arg11: memref<1x2xf32, #tpu.memory_space<vmem>>) attributes {dimension_semantics = [#tpu.dimension_semantics<arbitrary>], iteration_bounds = array<i64: 1>, scalar_prefetch = 0 : i64, scratch_operands = 0 : i64, tpu.core_type = #tpu.core_type<tc>, window_params = [{pipeline_mode = #tpu.pipeline_mode<synchronous>, transform_indices = @transform_0, window_bounds = array<i64: 16, 32>}, {pipeline_mode = #tpu.pipeline_mode<synchronous>, transform_indices = @transform_1, window_bounds = array<i64: 16, 16>}, {pipeline_mode = #tpu.pipeline_mode<synchronous>, transform_indices = @transform_2, window_bounds = array<i64: 4, 1, 32>}, {pipeline_mode = #tpu.pipeline_mode<synchronous>, transform_indices = @transform_3, window_bounds = array<i64: 2, 32, 96>}, {pipeline_mode = #tpu.pipeline_mode<synchronous>, transform_indices = @transform_4, window_bounds = array<i64: 3, 32, 32>}, {pipeline_mode = #tpu.pipeline_mode<synchronous>, transform_indices = @transform_5, window_bounds = array<i64: 2, 32, 64>}, {pipeline_mode = #tpu.pipeline_mode<synchronous>, transform_indices = @transform_6, window_bounds = array<i64: 2, 64, 32>}, {pipeline_mode = #tpu.pipeline_mode<synchronous>, transform_indices = @transform_7, window_bounds = array<i64: 2, 1, 160>}, {pipeline_mode = #tpu.pipeline_mode<synchronous>, transform_indices = @transform_8, window_bounds = array<i64: 12, 1, 32>}, {pipeline_mode = #tpu.pipeline_mode<synchronous>, transform_indices = @transform_9, window_bounds = array<i64: 1, 1>}, {pipeline_mode = #tpu.pipeline_mode<synchronous>, transform_indices = @transform_10, window_bounds = array<i64: 1, 2>}]} {
    %c0 = arith.constant 0 : index
    %c0_0 = arith.constant 0 : index
    %0 = vector.load %arg1[%c0, %c0_0] : memref<16x32xf32, #tpu.memory_space<vmem>>, vector<16x32xf32>
    %c0_1 = arith.constant 0 : index
    %c0_2 = arith.constant 0 : index
    %c0_3 = arith.constant 0 : index
    %1 = vector.load %arg3[%c0_1, %c0_2, %c0_3] : memref<4x1x32xf32, #tpu.memory_space<vmem>>, vector<1x1x32xf32>
    %2 = vector.shape_cast %1 : vector<1x1x32xf32> to vector<1x32xf32>
    %c1 = arith.constant 1 : index
    %c0_4 = arith.constant 0 : index
    %c0_5 = arith.constant 0 : index
    %3 = vector.load %arg3[%c1, %c0_4, %c0_5] : memref<4x1x32xf32, #tpu.memory_space<vmem>>, vector<1x1x32xf32>
    %4 = vector.shape_cast %3 : vector<1x1x32xf32> to vector<1x32xf32>
    %cst = arith.constant dense<0.000000e+00> : vector<16xf32>
    %5 = vector.multi_reduction <add>, %0, %cst [1] : vector<16x32xf32> to vector<16xf32>
    %6 = vector.shape_cast %5 : vector<16xf32> to vector<16x1xf32>
    %cst_6 = arith.constant 3.200000e+01 : f32
    %7 = vector.broadcast %cst_6 : f32 to vector<16x1xf32>
    %8 = arith.divf %6, %7 : vector<16x1xf32>
    %9 = vector.broadcast %8 : vector<16x1xf32> to vector<16x32xf32>
    %10 = arith.subf %0, %9 : vector<16x32xf32>
    %11 = arith.mulf %10, %10 : vector<16x32xf32>
    %cst_7 = arith.constant dense<0.000000e+00> : vector<16xf32>
    %12 = vector.multi_reduction <add>, %11, %cst_7 [1] : vector<16x32xf32> to vector<16xf32>
    %13 = vector.shape_cast %12 : vector<16xf32> to vector<16x1xf32>
    %cst_8 = arith.constant 3.200000e+01 : f32
    %14 = vector.broadcast %cst_8 : f32 to vector<16x1xf32>
    %15 = arith.divf %13, %14 : vector<16x1xf32>
    %16 = vector.broadcast %8 : vector<16x1xf32> to vector<16x32xf32>
    %17 = arith.subf %0, %16 : vector<16x32xf32>
    %cst_9 = arith.constant 9.99999974E-6 : f32
    %18 = vector.broadcast %cst_9 : f32 to vector<16x1xf32>
    %19 = arith.addf %15, %18 : vector<16x1xf32>
    %20 = math.rsqrt %19 : vector<16x1xf32>
    %21 = vector.broadcast %20 : vector<16x1xf32> to vector<16x32xf32>
    %22 = arith.mulf %17, %21 : vector<16x32xf32>
    %23 = vector.broadcast %2 : vector<1x32xf32> to vector<16x32xf32>
    %24 = arith.mulf %22, %23 : vector<16x32xf32>
    %25 = vector.broadcast %4 : vector<1x32xf32> to vector<16x32xf32>
    %26 = arith.addf %24, %25 : vector<16x32xf32>
    %c0_10 = arith.constant 0 : index
    %c0_11 = arith.constant 0 : index
    %27 = vector.load %arg2[%c0_10, %c0_11] : memref<16x16xf32, #tpu.memory_space<vmem>>, vector<16x16xf32>
    %c0_12 = arith.constant 0 : index
    %c0_13 = arith.constant 0 : index
    %c0_14 = arith.constant 0 : index
    %28 = vector.load %arg8[%c0_12, %c0_13, %c0_14] : memref<2x1x160xf32, #tpu.memory_space<vmem>>, vector<1x1x160xf32>
    %29 = vector.shape_cast %28 : vector<1x1x160xf32> to vector<1x160xf32>
    %c0_15 = arith.constant 0 : index
    %c0_16 = arith.constant 0 : index
    %c0_17 = arith.constant 0 : index
    %30 = vector.load %arg4[%c0_15, %c0_16, %c0_17] : memref<2x32x96xf32, #tpu.memory_space<vmem>>, vector<1x32x96xf32>
    %31 = vector.shape_cast %30 : vector<1x32x96xf32> to vector<32x96xf32>
    %cst_18 = arith.constant dense<0.000000e+00> : vector<16x96xf32>
    %32 = tpu.matmul %26, %31, %cst_18 {dimension_numbers = #tpu.dot_dimension_numbers<[1], [0], [0], [1], [0, 0, 1, 1], [], []>} : vector<16x32xf32>, vector<32x96xf32>, vector<16x96xf32> -> vector<16x96xf32>
    %33 = vector.extract_strided_slice %29 {offsets = [0, 0], sizes = [1, 96], strides = [1, 1]} : vector<1x160xf32> to vector<1x96xf32>
    %34 = vector.broadcast %33 : vector<1x96xf32> to vector<16x96xf32>
    %35 = arith.addf %32, %34 : vector<16x96xf32>
    %c0_19 = arith.constant 0 : index
    %c0_20 = arith.constant 0 : index
    %c0_21 = arith.constant 0 : index
    %36 = vector.load %arg5[%c0_19, %c0_20, %c0_21] : memref<3x32x32xf32, #tpu.memory_space<vmem>>, vector<1x32x32xf32>
    %37 = vector.shape_cast %36 : vector<1x32x32xf32> to vector<32x32xf32>
    %c0_22 = arith.constant 0 : index
    %c0_23 = arith.constant 0 : index
    %c0_24 = arith.constant 0 : index
    %38 = vector.load %arg9[%c0_22, %c0_23, %c0_24] : memref<12x1x32xf32, #tpu.memory_space<vmem>>, vector<1x1x32xf32>
    %39 = vector.shape_cast %38 : vector<1x1x32xf32> to vector<1x32xf32>
    %40 = vector.extract_strided_slice %35 {offsets = [0, 0], sizes = [16, 16], strides = [1, 1]} : vector<16x96xf32> to vector<16x16xf32>
    %41 = vector.extract_strided_slice %35 {offsets = [0, 32], sizes = [16, 16], strides = [1, 1]} : vector<16x96xf32> to vector<16x16xf32>
    %42 = vector.extract_strided_slice %35 {offsets = [0, 64], sizes = [16, 16], strides = [1, 1]} : vector<16x96xf32> to vector<16x16xf32>
    %cst_25 = arith.constant dense<0.000000e+00> : vector<16x16xf32>
    %43 = tpu.matmul %40, %41, %cst_25 {dimension_numbers = #tpu.dot_dimension_numbers<[1], [1], [0], [0], [0, 0, 1, 0], [], []>} : vector<16x16xf32>, vector<16x16xf32>, vector<16x16xf32> -> vector<16x16xf32>
    %44 = arith.addf %43, %27 : vector<16x16xf32>
    %cst_26 = arith.constant dense<0xFF800000> : vector<16xf32>
    %45 = vector.multi_reduction <maximumf>, %44, %cst_26 [1] : vector<16x16xf32> to vector<16xf32>
    %46 = vector.shape_cast %45 : vector<16xf32> to vector<16x1xf32>
    %47 = vector.broadcast %46 : vector<16x1xf32> to vector<16x16xf32>
    %48 = arith.subf %44, %47 : vector<16x16xf32>
    %49 = math.exp %48 : vector<16x16xf32>
    %cst_27 = arith.constant dense<0.000000e+00> : vector<16xf32>
    %50 = vector.multi_reduction <add>, %49, %cst_27 [1] : vector<16x16xf32> to vector<16xf32>
    %51 = vector.shape_cast %50 : vector<16xf32> to vector<16x1xf32>
    %52 = tpu.reciprocal %51 {approx = true} : vector<16x1xf32> -> vector<16x1xf32>
    %53 = vector.broadcast %52 : vector<16x1xf32> to vector<16x16xf32>
    %54 = arith.mulf %49, %53 : vector<16x16xf32>
    %cst_28 = arith.constant dense<0.000000e+00> : vector<16x16xf32>
    %55 = tpu.matmul %54, %42, %cst_28 {dimension_numbers = #tpu.dot_dimension_numbers<[1], [0], [0], [1], [0, 0, 1, 1], [], []>} : vector<16x16xf32>, vector<16x16xf32>, vector<16x16xf32> -> vector<16x16xf32>
    %56 = vector.extract_strided_slice %37 {offsets = [0, 0], sizes = [16, 32], strides = [1, 1]} : vector<32x32xf32> to vector<16x32xf32>
    %cst_29 = arith.constant dense<0.000000e+00> : vector<16x32xf32>
    %57 = tpu.matmul %55, %56, %cst_29 {dimension_numbers = #tpu.dot_dimension_numbers<[1], [0], [0], [1], [0, 0, 1, 1], [], []>} : vector<16x16xf32>, vector<16x32xf32>, vector<16x32xf32> -> vector<16x32xf32>
    %58 = vector.broadcast %39 : vector<1x32xf32> to vector<16x32xf32>
    %59 = arith.addf %58, %57 : vector<16x32xf32>
    %60 = vector.extract_strided_slice %35 {offsets = [0, 16], sizes = [16, 16], strides = [1, 1]} : vector<16x96xf32> to vector<16x16xf32>
    %61 = vector.extract_strided_slice %35 {offsets = [0, 48], sizes = [16, 16], strides = [1, 1]} : vector<16x96xf32> to vector<16x16xf32>
    %62 = vector.extract_strided_slice %35 {offsets = [0, 80], sizes = [16, 16], strides = [1, 1]} : vector<16x96xf32> to vector<16x16xf32>
    %cst_30 = arith.constant dense<0.000000e+00> : vector<16x16xf32>
    %63 = tpu.matmul %60, %61, %cst_30 {dimension_numbers = #tpu.dot_dimension_numbers<[1], [1], [0], [0], [0, 0, 1, 0], [], []>} : vector<16x16xf32>, vector<16x16xf32>, vector<16x16xf32> -> vector<16x16xf32>
    %64 = arith.addf %63, %27 : vector<16x16xf32>
    %cst_31 = arith.constant dense<0xFF800000> : vector<16xf32>
    %65 = vector.multi_reduction <maximumf>, %64, %cst_31 [1] : vector<16x16xf32> to vector<16xf32>
    %66 = vector.shape_cast %65 : vector<16xf32> to vector<16x1xf32>
    %67 = vector.broadcast %66 : vector<16x1xf32> to vector<16x16xf32>
    %68 = arith.subf %64, %67 : vector<16x16xf32>
    %69 = math.exp %68 : vector<16x16xf32>
    %cst_32 = arith.constant dense<0.000000e+00> : vector<16xf32>
    %70 = vector.multi_reduction <add>, %69, %cst_32 [1] : vector<16x16xf32> to vector<16xf32>
    %71 = vector.shape_cast %70 : vector<16xf32> to vector<16x1xf32>
    %72 = tpu.reciprocal %71 {approx = true} : vector<16x1xf32> -> vector<16x1xf32>
    %73 = vector.broadcast %72 : vector<16x1xf32> to vector<16x16xf32>
    %74 = arith.mulf %69, %73 : vector<16x16xf32>
    %cst_33 = arith.constant dense<0.000000e+00> : vector<16x16xf32>
    %75 = tpu.matmul %74, %62, %cst_33 {dimension_numbers = #tpu.dot_dimension_numbers<[1], [0], [0], [1], [0, 0, 1, 1], [], []>} : vector<16x16xf32>, vector<16x16xf32>, vector<16x16xf32> -> vector<16x16xf32>
    %76 = vector.extract_strided_slice %37 {offsets = [16, 0], sizes = [16, 32], strides = [1, 1]} : vector<32x32xf32> to vector<16x32xf32>
    %cst_34 = arith.constant dense<0.000000e+00> : vector<16x32xf32>
    %77 = tpu.matmul %75, %76, %cst_34 {dimension_numbers = #tpu.dot_dimension_numbers<[1], [0], [0], [1], [0, 0, 1, 1], [], []>} : vector<16x16xf32>, vector<16x32xf32>, vector<16x32xf32> -> vector<16x32xf32>
    %78 = arith.addf %59, %77 : vector<16x32xf32>
    %79 = arith.addf %78, %26 : vector<16x32xf32>
    %c1_35 = arith.constant 1 : index
    %c0_36 = arith.constant 0 : index
    %c0_37 = arith.constant 0 : index
    %80 = vector.load %arg9[%c1_35, %c0_36, %c0_37] : memref<12x1x32xf32, #tpu.memory_space<vmem>>, vector<1x1x32xf32>
    %81 = vector.shape_cast %80 : vector<1x1x32xf32> to vector<1x32xf32>
    %c2 = arith.constant 2 : index
    %c0_38 = arith.constant 0 : index
    %c0_39 = arith.constant 0 : index
    %82 = vector.load %arg9[%c2, %c0_38, %c0_39] : memref<12x1x32xf32, #tpu.memory_space<vmem>>, vector<1x1x32xf32>
    %83 = vector.shape_cast %82 : vector<1x1x32xf32> to vector<1x32xf32>
    %cst_40 = arith.constant dense<0.000000e+00> : vector<16xf32>
    %84 = vector.multi_reduction <add>, %79, %cst_40 [1] : vector<16x32xf32> to vector<16xf32>
    %85 = vector.shape_cast %84 : vector<16xf32> to vector<16x1xf32>
    %cst_41 = arith.constant 3.200000e+01 : f32
    %86 = vector.broadcast %cst_41 : f32 to vector<16x1xf32>
    %87 = arith.divf %85, %86 : vector<16x1xf32>
    %88 = vector.broadcast %87 : vector<16x1xf32> to vector<16x32xf32>
    %89 = arith.subf %79, %88 : vector<16x32xf32>
    %90 = arith.mulf %89, %89 : vector<16x32xf32>
    %cst_42 = arith.constant dense<0.000000e+00> : vector<16xf32>
    %91 = vector.multi_reduction <add>, %90, %cst_42 [1] : vector<16x32xf32> to vector<16xf32>
    %92 = vector.shape_cast %91 : vector<16xf32> to vector<16x1xf32>
    %cst_43 = arith.constant 3.200000e+01 : f32
    %93 = vector.broadcast %cst_43 : f32 to vector<16x1xf32>
    %94 = arith.divf %92, %93 : vector<16x1xf32>
    %95 = vector.broadcast %87 : vector<16x1xf32> to vector<16x32xf32>
    %96 = arith.subf %79, %95 : vector<16x32xf32>
    %cst_44 = arith.constant 9.99999974E-6 : f32
    %97 = vector.broadcast %cst_44 : f32 to vector<16x1xf32>
    %98 = arith.addf %94, %97 : vector<16x1xf32>
    %99 = math.rsqrt %98 : vector<16x1xf32>
    %100 = vector.broadcast %99 : vector<16x1xf32> to vector<16x32xf32>
    %101 = arith.mulf %96, %100 : vector<16x32xf32>
    %102 = vector.broadcast %81 : vector<1x32xf32> to vector<16x32xf32>
    %103 = arith.mulf %101, %102 : vector<16x32xf32>
    %104 = vector.broadcast %83 : vector<1x32xf32> to vector<16x32xf32>
    %105 = arith.addf %103, %104 : vector<16x32xf32>
    %c0_45 = arith.constant 0 : index
    %c0_46 = arith.constant 0 : index
    %c0_47 = arith.constant 0 : index
    %106 = vector.load %arg6[%c0_45, %c0_46, %c0_47] : memref<2x32x64xf32, #tpu.memory_space<vmem>>, vector<1x32x64xf32>
    %107 = vector.shape_cast %106 : vector<1x32x64xf32> to vector<32x64xf32>
    %cst_48 = arith.constant dense<0.000000e+00> : vector<16x64xf32>
    %108 = tpu.matmul %105, %107, %cst_48 {dimension_numbers = #tpu.dot_dimension_numbers<[1], [0], [0], [1], [0, 0, 1, 1], [], []>} : vector<16x32xf32>, vector<32x64xf32>, vector<16x64xf32> -> vector<16x64xf32>
    %109 = vector.extract_strided_slice %29 {offsets = [0, 96], sizes = [1, 64], strides = [1, 1]} : vector<1x160xf32> to vector<1x64xf32>
    %110 = vector.broadcast %109 : vector<1x64xf32> to vector<16x64xf32>
    %111 = arith.addf %108, %110 : vector<16x64xf32>
    %112 = arith.mulf %111, %111 : vector<16x64xf32>
    %113 = arith.mulf %111, %112 : vector<16x64xf32>
    %cst_49 = arith.constant 4.471500e-02 : f32
    %114 = vector.broadcast %cst_49 : f32 to vector<16x64xf32>
    %115 = arith.mulf %114, %113 : vector<16x64xf32>
    %116 = arith.addf %111, %115 : vector<16x64xf32>
    %cst_50 = arith.constant 0.797884583 : f32
    %117 = vector.broadcast %cst_50 : f32 to vector<16x64xf32>
    %118 = arith.mulf %117, %116 : vector<16x64xf32>
    %119 = math.tanh %118 : vector<16x64xf32>
    %cst_51 = arith.constant 1.000000e+00 : f32
    %120 = vector.broadcast %cst_51 : f32 to vector<16x64xf32>
    %121 = arith.addf %120, %119 : vector<16x64xf32>
    %cst_52 = arith.constant 5.000000e-01 : f32
    %122 = vector.broadcast %cst_52 : f32 to vector<16x64xf32>
    %123 = arith.mulf %122, %121 : vector<16x64xf32>
    %124 = arith.mulf %111, %123 : vector<16x64xf32>
    %c0_53 = arith.constant 0 : index
    %c0_54 = arith.constant 0 : index
    %c0_55 = arith.constant 0 : index
    %125 = vector.load %arg7[%c0_53, %c0_54, %c0_55] : memref<2x64x32xf32, #tpu.memory_space<vmem>>, vector<1x64x32xf32>
    %126 = vector.shape_cast %125 : vector<1x64x32xf32> to vector<64x32xf32>
    %cst_56 = arith.constant dense<0.000000e+00> : vector<16x32xf32>
    %127 = tpu.matmul %124, %126, %cst_56 {dimension_numbers = #tpu.dot_dimension_numbers<[1], [0], [0], [1], [0, 0, 1, 1], [], []>} : vector<16x64xf32>, vector<64x32xf32>, vector<16x32xf32> -> vector<16x32xf32>
    %c3 = arith.constant 3 : index
    %c0_57 = arith.constant 0 : index
    %c0_58 = arith.constant 0 : index
    %128 = vector.load %arg9[%c3, %c0_57, %c0_58] : memref<12x1x32xf32, #tpu.memory_space<vmem>>, vector<1x1x32xf32>
    %129 = vector.shape_cast %128 : vector<1x1x32xf32> to vector<1x32xf32>
    %130 = vector.broadcast %129 : vector<1x32xf32> to vector<16x32xf32>
    %131 = arith.addf %127, %130 : vector<16x32xf32>
    %132 = arith.addf %131, %105 : vector<16x32xf32>
    %c4 = arith.constant 4 : index
    %c0_59 = arith.constant 0 : index
    %c0_60 = arith.constant 0 : index
    %133 = vector.load %arg9[%c4, %c0_59, %c0_60] : memref<12x1x32xf32, #tpu.memory_space<vmem>>, vector<1x1x32xf32>
    %134 = vector.shape_cast %133 : vector<1x1x32xf32> to vector<1x32xf32>
    %c5 = arith.constant 5 : index
    %c0_61 = arith.constant 0 : index
    %c0_62 = arith.constant 0 : index
    %135 = vector.load %arg9[%c5, %c0_61, %c0_62] : memref<12x1x32xf32, #tpu.memory_space<vmem>>, vector<1x1x32xf32>
    %136 = vector.shape_cast %135 : vector<1x1x32xf32> to vector<1x32xf32>
    %cst_63 = arith.constant dense<0.000000e+00> : vector<16xf32>
    %137 = vector.multi_reduction <add>, %132, %cst_63 [1] : vector<16x32xf32> to vector<16xf32>
    %138 = vector.shape_cast %137 : vector<16xf32> to vector<16x1xf32>
    %cst_64 = arith.constant 3.200000e+01 : f32
    %139 = vector.broadcast %cst_64 : f32 to vector<16x1xf32>
    %140 = arith.divf %138, %139 : vector<16x1xf32>
    %141 = vector.broadcast %140 : vector<16x1xf32> to vector<16x32xf32>
    %142 = arith.subf %132, %141 : vector<16x32xf32>
    %143 = arith.mulf %142, %142 : vector<16x32xf32>
    %cst_65 = arith.constant dense<0.000000e+00> : vector<16xf32>
    %144 = vector.multi_reduction <add>, %143, %cst_65 [1] : vector<16x32xf32> to vector<16xf32>
    %145 = vector.shape_cast %144 : vector<16xf32> to vector<16x1xf32>
    %cst_66 = arith.constant 3.200000e+01 : f32
    %146 = vector.broadcast %cst_66 : f32 to vector<16x1xf32>
    %147 = arith.divf %145, %146 : vector<16x1xf32>
    %148 = vector.broadcast %140 : vector<16x1xf32> to vector<16x32xf32>
    %149 = arith.subf %132, %148 : vector<16x32xf32>
    %cst_67 = arith.constant 9.99999974E-6 : f32
    %150 = vector.broadcast %cst_67 : f32 to vector<16x1xf32>
    %151 = arith.addf %147, %150 : vector<16x1xf32>
    %152 = math.rsqrt %151 : vector<16x1xf32>
    %153 = vector.broadcast %152 : vector<16x1xf32> to vector<16x32xf32>
    %154 = arith.mulf %149, %153 : vector<16x32xf32>
    %155 = vector.broadcast %134 : vector<1x32xf32> to vector<16x32xf32>
    %156 = arith.mulf %154, %155 : vector<16x32xf32>
    %157 = vector.broadcast %136 : vector<1x32xf32> to vector<16x32xf32>
    %158 = arith.addf %156, %157 : vector<16x32xf32>
    %c1_68 = arith.constant 1 : index
    %c0_69 = arith.constant 0 : index
    %c0_70 = arith.constant 0 : index
    %159 = vector.load %arg8[%c1_68, %c0_69, %c0_70] : memref<2x1x160xf32, #tpu.memory_space<vmem>>, vector<1x1x160xf32>
    %160 = vector.shape_cast %159 : vector<1x1x160xf32> to vector<1x160xf32>
    %c1_71 = arith.constant 1 : index
    %c0_72 = arith.constant 0 : index
    %c0_73 = arith.constant 0 : index
    %161 = vector.load %arg4[%c1_71, %c0_72, %c0_73] : memref<2x32x96xf32, #tpu.memory_space<vmem>>, vector<1x32x96xf32>
    %162 = vector.shape_cast %161 : vector<1x32x96xf32> to vector<32x96xf32>
    %cst_74 = arith.constant dense<0.000000e+00> : vector<16x96xf32>
    %163 = tpu.matmul %158, %162, %cst_74 {dimension_numbers = #tpu.dot_dimension_numbers<[1], [0], [0], [1], [0, 0, 1, 1], [], []>} : vector<16x32xf32>, vector<32x96xf32>, vector<16x96xf32> -> vector<16x96xf32>
    %164 = vector.extract_strided_slice %160 {offsets = [0, 0], sizes = [1, 96], strides = [1, 1]} : vector<1x160xf32> to vector<1x96xf32>
    %165 = vector.broadcast %164 : vector<1x96xf32> to vector<16x96xf32>
    %166 = arith.addf %163, %165 : vector<16x96xf32>
    %c1_75 = arith.constant 1 : index
    %c0_76 = arith.constant 0 : index
    %c0_77 = arith.constant 0 : index
    %167 = vector.load %arg5[%c1_75, %c0_76, %c0_77] : memref<3x32x32xf32, #tpu.memory_space<vmem>>, vector<1x32x32xf32>
    %168 = vector.shape_cast %167 : vector<1x32x32xf32> to vector<32x32xf32>
    %c6 = arith.constant 6 : index
    %c0_78 = arith.constant 0 : index
    %c0_79 = arith.constant 0 : index
    %169 = vector.load %arg9[%c6, %c0_78, %c0_79] : memref<12x1x32xf32, #tpu.memory_space<vmem>>, vector<1x1x32xf32>
    %170 = vector.shape_cast %169 : vector<1x1x32xf32> to vector<1x32xf32>
    %171 = vector.extract_strided_slice %166 {offsets = [0, 0], sizes = [16, 16], strides = [1, 1]} : vector<16x96xf32> to vector<16x16xf32>
    %172 = vector.extract_strided_slice %166 {offsets = [0, 32], sizes = [16, 16], strides = [1, 1]} : vector<16x96xf32> to vector<16x16xf32>
    %173 = vector.extract_strided_slice %166 {offsets = [0, 64], sizes = [16, 16], strides = [1, 1]} : vector<16x96xf32> to vector<16x16xf32>
    %cst_80 = arith.constant dense<0.000000e+00> : vector<16x16xf32>
    %174 = tpu.matmul %171, %172, %cst_80 {dimension_numbers = #tpu.dot_dimension_numbers<[1], [1], [0], [0], [0, 0, 1, 0], [], []>} : vector<16x16xf32>, vector<16x16xf32>, vector<16x16xf32> -> vector<16x16xf32>
    %175 = arith.addf %174, %27 : vector<16x16xf32>
    %cst_81 = arith.constant dense<0xFF800000> : vector<16xf32>
    %176 = vector.multi_reduction <maximumf>, %175, %cst_81 [1] : vector<16x16xf32> to vector<16xf32>
    %177 = vector.shape_cast %176 : vector<16xf32> to vector<16x1xf32>
    %178 = vector.broadcast %177 : vector<16x1xf32> to vector<16x16xf32>
    %179 = arith.subf %175, %178 : vector<16x16xf32>
    %180 = math.exp %179 : vector<16x16xf32>
    %cst_82 = arith.constant dense<0.000000e+00> : vector<16xf32>
    %181 = vector.multi_reduction <add>, %180, %cst_82 [1] : vector<16x16xf32> to vector<16xf32>
    %182 = vector.shape_cast %181 : vector<16xf32> to vector<16x1xf32>
    %183 = tpu.reciprocal %182 {approx = true} : vector<16x1xf32> -> vector<16x1xf32>
    %184 = vector.broadcast %183 : vector<16x1xf32> to vector<16x16xf32>
    %185 = arith.mulf %180, %184 : vector<16x16xf32>
    %cst_83 = arith.constant dense<0.000000e+00> : vector<16x16xf32>
    %186 = tpu.matmul %185, %173, %cst_83 {dimension_numbers = #tpu.dot_dimension_numbers<[1], [0], [0], [1], [0, 0, 1, 1], [], []>} : vector<16x16xf32>, vector<16x16xf32>, vector<16x16xf32> -> vector<16x16xf32>
    %187 = vector.extract_strided_slice %168 {offsets = [0, 0], sizes = [16, 32], strides = [1, 1]} : vector<32x32xf32> to vector<16x32xf32>
    %cst_84 = arith.constant dense<0.000000e+00> : vector<16x32xf32>
    %188 = tpu.matmul %186, %187, %cst_84 {dimension_numbers = #tpu.dot_dimension_numbers<[1], [0], [0], [1], [0, 0, 1, 1], [], []>} : vector<16x16xf32>, vector<16x32xf32>, vector<16x32xf32> -> vector<16x32xf32>
    %189 = vector.broadcast %170 : vector<1x32xf32> to vector<16x32xf32>
    %190 = arith.addf %189, %188 : vector<16x32xf32>
    %191 = vector.extract_strided_slice %166 {offsets = [0, 16], sizes = [16, 16], strides = [1, 1]} : vector<16x96xf32> to vector<16x16xf32>
    %192 = vector.extract_strided_slice %166 {offsets = [0, 48], sizes = [16, 16], strides = [1, 1]} : vector<16x96xf32> to vector<16x16xf32>
    %193 = vector.extract_strided_slice %166 {offsets = [0, 80], sizes = [16, 16], strides = [1, 1]} : vector<16x96xf32> to vector<16x16xf32>
    %cst_85 = arith.constant dense<0.000000e+00> : vector<16x16xf32>
    %194 = tpu.matmul %191, %192, %cst_85 {dimension_numbers = #tpu.dot_dimension_numbers<[1], [1], [0], [0], [0, 0, 1, 0], [], []>} : vector<16x16xf32>, vector<16x16xf32>, vector<16x16xf32> -> vector<16x16xf32>
    %195 = arith.addf %194, %27 : vector<16x16xf32>
    %cst_86 = arith.constant dense<0xFF800000> : vector<16xf32>
    %196 = vector.multi_reduction <maximumf>, %195, %cst_86 [1] : vector<16x16xf32> to vector<16xf32>
    %197 = vector.shape_cast %196 : vector<16xf32> to vector<16x1xf32>
    %198 = vector.broadcast %197 : vector<16x1xf32> to vector<16x16xf32>
    %199 = arith.subf %195, %198 : vector<16x16xf32>
    %200 = math.exp %199 : vector<16x16xf32>
    %cst_87 = arith.constant dense<0.000000e+00> : vector<16xf32>
    %201 = vector.multi_reduction <add>, %200, %cst_87 [1] : vector<16x16xf32> to vector<16xf32>
    %202 = vector.shape_cast %201 : vector<16xf32> to vector<16x1xf32>
    %203 = tpu.reciprocal %202 {approx = true} : vector<16x1xf32> -> vector<16x1xf32>
    %204 = vector.broadcast %203 : vector<16x1xf32> to vector<16x16xf32>
    %205 = arith.mulf %200, %204 : vector<16x16xf32>
    %cst_88 = arith.constant dense<0.000000e+00> : vector<16x16xf32>
    %206 = tpu.matmul %205, %193, %cst_88 {dimension_numbers = #tpu.dot_dimension_numbers<[1], [0], [0], [1], [0, 0, 1, 1], [], []>} : vector<16x16xf32>, vector<16x16xf32>, vector<16x16xf32> -> vector<16x16xf32>
    %207 = vector.extract_strided_slice %168 {offsets = [16, 0], sizes = [16, 32], strides = [1, 1]} : vector<32x32xf32> to vector<16x32xf32>
    %cst_89 = arith.constant dense<0.000000e+00> : vector<16x32xf32>
    %208 = tpu.matmul %206, %207, %cst_89 {dimension_numbers = #tpu.dot_dimension_numbers<[1], [0], [0], [1], [0, 0, 1, 1], [], []>} : vector<16x16xf32>, vector<16x32xf32>, vector<16x32xf32> -> vector<16x32xf32>
    %209 = arith.addf %190, %208 : vector<16x32xf32>
    %210 = arith.addf %209, %158 : vector<16x32xf32>
    %c7 = arith.constant 7 : index
    %c0_90 = arith.constant 0 : index
    %c0_91 = arith.constant 0 : index
    %211 = vector.load %arg9[%c7, %c0_90, %c0_91] : memref<12x1x32xf32, #tpu.memory_space<vmem>>, vector<1x1x32xf32>
    %212 = vector.shape_cast %211 : vector<1x1x32xf32> to vector<1x32xf32>
    %c8 = arith.constant 8 : index
    %c0_92 = arith.constant 0 : index
    %c0_93 = arith.constant 0 : index
    %213 = vector.load %arg9[%c8, %c0_92, %c0_93] : memref<12x1x32xf32, #tpu.memory_space<vmem>>, vector<1x1x32xf32>
    %214 = vector.shape_cast %213 : vector<1x1x32xf32> to vector<1x32xf32>
    %cst_94 = arith.constant dense<0.000000e+00> : vector<16xf32>
    %215 = vector.multi_reduction <add>, %210, %cst_94 [1] : vector<16x32xf32> to vector<16xf32>
    %216 = vector.shape_cast %215 : vector<16xf32> to vector<16x1xf32>
    %cst_95 = arith.constant 3.200000e+01 : f32
    %217 = vector.broadcast %cst_95 : f32 to vector<16x1xf32>
    %218 = arith.divf %216, %217 : vector<16x1xf32>
    %219 = vector.broadcast %218 : vector<16x1xf32> to vector<16x32xf32>
    %220 = arith.subf %210, %219 : vector<16x32xf32>
    %221 = arith.mulf %220, %220 : vector<16x32xf32>
    %cst_96 = arith.constant dense<0.000000e+00> : vector<16xf32>
    %222 = vector.multi_reduction <add>, %221, %cst_96 [1] : vector<16x32xf32> to vector<16xf32>
    %223 = vector.shape_cast %222 : vector<16xf32> to vector<16x1xf32>
    %cst_97 = arith.constant 3.200000e+01 : f32
    %224 = vector.broadcast %cst_97 : f32 to vector<16x1xf32>
    %225 = arith.divf %223, %224 : vector<16x1xf32>
    %226 = vector.broadcast %218 : vector<16x1xf32> to vector<16x32xf32>
    %227 = arith.subf %210, %226 : vector<16x32xf32>
    %cst_98 = arith.constant 9.99999974E-6 : f32
    %228 = vector.broadcast %cst_98 : f32 to vector<16x1xf32>
    %229 = arith.addf %225, %228 : vector<16x1xf32>
    %230 = math.rsqrt %229 : vector<16x1xf32>
    %231 = vector.broadcast %230 : vector<16x1xf32> to vector<16x32xf32>
    %232 = arith.mulf %227, %231 : vector<16x32xf32>
    %233 = vector.broadcast %212 : vector<1x32xf32> to vector<16x32xf32>
    %234 = arith.mulf %232, %233 : vector<16x32xf32>
    %235 = vector.broadcast %214 : vector<1x32xf32> to vector<16x32xf32>
    %236 = arith.addf %234, %235 : vector<16x32xf32>
    %c1_99 = arith.constant 1 : index
    %c0_100 = arith.constant 0 : index
    %c0_101 = arith.constant 0 : index
    %237 = vector.load %arg6[%c1_99, %c0_100, %c0_101] : memref<2x32x64xf32, #tpu.memory_space<vmem>>, vector<1x32x64xf32>
    %238 = vector.shape_cast %237 : vector<1x32x64xf32> to vector<32x64xf32>
    %cst_102 = arith.constant dense<0.000000e+00> : vector<16x64xf32>
    %239 = tpu.matmul %236, %238, %cst_102 {dimension_numbers = #tpu.dot_dimension_numbers<[1], [0], [0], [1], [0, 0, 1, 1], [], []>} : vector<16x32xf32>, vector<32x64xf32>, vector<16x64xf32> -> vector<16x64xf32>
    %240 = vector.extract_strided_slice %160 {offsets = [0, 96], sizes = [1, 64], strides = [1, 1]} : vector<1x160xf32> to vector<1x64xf32>
    %241 = vector.broadcast %240 : vector<1x64xf32> to vector<16x64xf32>
    %242 = arith.addf %239, %241 : vector<16x64xf32>
    %243 = arith.mulf %242, %242 : vector<16x64xf32>
    %244 = arith.mulf %242, %243 : vector<16x64xf32>
    %cst_103 = arith.constant 4.471500e-02 : f32
    %245 = vector.broadcast %cst_103 : f32 to vector<16x64xf32>
    %246 = arith.mulf %245, %244 : vector<16x64xf32>
    %247 = arith.addf %242, %246 : vector<16x64xf32>
    %cst_104 = arith.constant 0.797884583 : f32
    %248 = vector.broadcast %cst_104 : f32 to vector<16x64xf32>
    %249 = arith.mulf %248, %247 : vector<16x64xf32>
    %250 = math.tanh %249 : vector<16x64xf32>
    %cst_105 = arith.constant 1.000000e+00 : f32
    %251 = vector.broadcast %cst_105 : f32 to vector<16x64xf32>
    %252 = arith.addf %251, %250 : vector<16x64xf32>
    %cst_106 = arith.constant 5.000000e-01 : f32
    %253 = vector.broadcast %cst_106 : f32 to vector<16x64xf32>
    %254 = arith.mulf %253, %252 : vector<16x64xf32>
    %255 = arith.mulf %242, %254 : vector<16x64xf32>
    %c1_107 = arith.constant 1 : index
    %c0_108 = arith.constant 0 : index
    %c0_109 = arith.constant 0 : index
    %256 = vector.load %arg7[%c1_107, %c0_108, %c0_109] : memref<2x64x32xf32, #tpu.memory_space<vmem>>, vector<1x64x32xf32>
    %257 = vector.shape_cast %256 : vector<1x64x32xf32> to vector<64x32xf32>
    %cst_110 = arith.constant dense<0.000000e+00> : vector<16x32xf32>
    %258 = tpu.matmul %255, %257, %cst_110 {dimension_numbers = #tpu.dot_dimension_numbers<[1], [0], [0], [1], [0, 0, 1, 1], [], []>} : vector<16x64xf32>, vector<64x32xf32>, vector<16x32xf32> -> vector<16x32xf32>
    %c9 = arith.constant 9 : index
    %c0_111 = arith.constant 0 : index
    %c0_112 = arith.constant 0 : index
    %259 = vector.load %arg9[%c9, %c0_111, %c0_112] : memref<12x1x32xf32, #tpu.memory_space<vmem>>, vector<1x1x32xf32>
    %260 = vector.shape_cast %259 : vector<1x1x32xf32> to vector<1x32xf32>
    %261 = vector.broadcast %260 : vector<1x32xf32> to vector<16x32xf32>
    %262 = arith.addf %258, %261 : vector<16x32xf32>
    %263 = arith.addf %262, %236 : vector<16x32xf32>
    %c10 = arith.constant 10 : index
    %c0_113 = arith.constant 0 : index
    %c0_114 = arith.constant 0 : index
    %264 = vector.load %arg9[%c10, %c0_113, %c0_114] : memref<12x1x32xf32, #tpu.memory_space<vmem>>, vector<1x1x32xf32>
    %265 = vector.shape_cast %264 : vector<1x1x32xf32> to vector<1x32xf32>
    %c11 = arith.constant 11 : index
    %c0_115 = arith.constant 0 : index
    %c0_116 = arith.constant 0 : index
    %266 = vector.load %arg9[%c11, %c0_115, %c0_116] : memref<12x1x32xf32, #tpu.memory_space<vmem>>, vector<1x1x32xf32>
    %267 = vector.shape_cast %266 : vector<1x1x32xf32> to vector<1x32xf32>
    %cst_117 = arith.constant dense<0.000000e+00> : vector<16xf32>
    %268 = vector.multi_reduction <add>, %263, %cst_117 [1] : vector<16x32xf32> to vector<16xf32>
    %269 = vector.shape_cast %268 : vector<16xf32> to vector<16x1xf32>
    %cst_118 = arith.constant 3.200000e+01 : f32
    %270 = vector.broadcast %cst_118 : f32 to vector<16x1xf32>
    %271 = arith.divf %269, %270 : vector<16x1xf32>
    %272 = vector.broadcast %271 : vector<16x1xf32> to vector<16x32xf32>
    %273 = arith.subf %263, %272 : vector<16x32xf32>
    %274 = arith.mulf %273, %273 : vector<16x32xf32>
    %cst_119 = arith.constant dense<0.000000e+00> : vector<16xf32>
    %275 = vector.multi_reduction <add>, %274, %cst_119 [1] : vector<16x32xf32> to vector<16xf32>
    %276 = vector.shape_cast %275 : vector<16xf32> to vector<16x1xf32>
    %cst_120 = arith.constant 3.200000e+01 : f32
    %277 = vector.broadcast %cst_120 : f32 to vector<16x1xf32>
    %278 = arith.divf %276, %277 : vector<16x1xf32>
    %279 = vector.broadcast %271 : vector<16x1xf32> to vector<16x32xf32>
    %280 = arith.subf %263, %279 : vector<16x32xf32>
    %cst_121 = arith.constant 9.99999974E-6 : f32
    %281 = vector.broadcast %cst_121 : f32 to vector<16x1xf32>
    %282 = arith.addf %278, %281 : vector<16x1xf32>
    %283 = math.rsqrt %282 : vector<16x1xf32>
    %284 = vector.broadcast %283 : vector<16x1xf32> to vector<16x32xf32>
    %285 = arith.mulf %280, %284 : vector<16x32xf32>
    %286 = vector.broadcast %265 : vector<1x32xf32> to vector<16x32xf32>
    %287 = arith.mulf %285, %286 : vector<16x32xf32>
    %288 = vector.broadcast %267 : vector<1x32xf32> to vector<16x32xf32>
    %289 = arith.addf %287, %288 : vector<16x32xf32>
    %290 = vector.extract_strided_slice %289 {offsets = [0, 0], sizes = [1, 32], strides = [1, 1]} : vector<16x32xf32> to vector<1x32xf32>
    %291 = vector.extract_strided_slice %289 {offsets = [8, 0], sizes = [1, 32], strides = [1, 1]} : vector<16x32xf32> to vector<1x32xf32>
    %292 = tpu.concatenate %290, %291 in 0 : vector<1x32xf32>, vector<1x32xf32> -> vector<2x32xf32>
    %c2_122 = arith.constant 2 : index
    %c0_123 = arith.constant 0 : index
    %c0_124 = arith.constant 0 : index
    %293 = vector.load %arg5[%c2_122, %c0_123, %c0_124] : memref<3x32x32xf32, #tpu.memory_space<vmem>>, vector<1x32x32xf32>
    %294 = vector.shape_cast %293 : vector<1x32x32xf32> to vector<32x32xf32>
    %cst_125 = arith.constant dense<0.000000e+00> : vector<2x32xf32>
    %295 = tpu.matmul %292, %294, %cst_125 {dimension_numbers = #tpu.dot_dimension_numbers<[1], [0], [0], [1], [0, 0, 1, 1], [], []>} : vector<2x32xf32>, vector<32x32xf32>, vector<2x32xf32> -> vector<2x32xf32>
    %c2_126 = arith.constant 2 : index
    %c0_127 = arith.constant 0 : index
    %c0_128 = arith.constant 0 : index
    %296 = vector.load %arg3[%c2_126, %c0_127, %c0_128] : memref<4x1x32xf32, #tpu.memory_space<vmem>>, vector<1x1x32xf32>
    %297 = vector.shape_cast %296 : vector<1x1x32xf32> to vector<1x32xf32>
    %298 = vector.broadcast %297 : vector<1x32xf32> to vector<2x32xf32>
    %299 = arith.addf %295, %298 : vector<2x32xf32>
    %300 = math.tanh %299 : vector<2x32xf32>
    %c3_129 = arith.constant 3 : index
    %c0_130 = arith.constant 0 : index
    %c0_131 = arith.constant 0 : index
    %301 = vector.load %arg3[%c3_129, %c0_130, %c0_131] : memref<4x1x32xf32, #tpu.memory_space<vmem>>, vector<1x1x32xf32>
    %302 = vector.shape_cast %301 : vector<1x1x32xf32> to vector<1x32xf32>
    %cst_132 = arith.constant dense<0.000000e+00> : vector<1x2xf32>
    %303 = tpu.matmul %302, %300, %cst_132 {dimension_numbers = #tpu.dot_dimension_numbers<[1], [1], [0], [0], [0, 0, 1, 0], [], []>} : vector<1x32xf32>, vector<2x32xf32>, vector<1x2xf32> -> vector<1x2xf32>
    %c0_133 = arith.constant 0 : index
    %c0_134 = arith.constant 0 : index
    %304 = vector.load %arg10[%c0_133, %c0_134] : memref<1x1xf32, #tpu.memory_space<vmem>>, vector<1x1xf32>
    %305 = vector.broadcast %304 : vector<1x1xf32> to vector<1x2xf32>
    %306 = arith.addf %303, %305 : vector<1x2xf32>
    %c0_135 = arith.constant 0 : index
    %c0_136 = arith.constant 0 : index
    %307 = vector.load %arg11[%c0_135, %c0_136] : memref<1x2xf32, #tpu.memory_space<vmem>>, vector<1x2xf32>
    tpu.vector_store %arg11[%c0_135, %c0_136], %306 {strides = array<i32>} : memref<1x2xf32, #tpu.memory_space<vmem>>, vector<1x2xf32>,
    return
  }
  func.func @transform_0(%arg0: i32) -> (i32, i32) {
    %c0_i32 = arith.constant 0 : i32
    %c0_i32_0 = arith.constant 0 : i32
    %c0_i32_1 = arith.constant 0 : i32
    return %c0_i32, %c0_i32_0 : i32, i32
  }
  func.func @transform_1(%arg0: i32) -> (i32, i32) {
    %c0_i32 = arith.constant 0 : i32
    %c0_i32_0 = arith.constant 0 : i32
    %c0_i32_1 = arith.constant 0 : i32
    return %c0_i32, %c0_i32_0 : i32, i32
  }
  func.func @transform_2(%arg0: i32) -> (i32, i32, i32) {
    %c0_i32 = arith.constant 0 : i32
    %c0_i32_0 = arith.constant 0 : i32
    %c0_i32_1 = arith.constant 0 : i32
    %c0_i32_2 = arith.constant 0 : i32
    return %c0_i32, %c0_i32_0, %c0_i32_1 : i32, i32, i32
  }
  func.func @transform_3(%arg0: i32) -> (i32, i32, i32) {
    %c0_i32 = arith.constant 0 : i32
    %c0_i32_0 = arith.constant 0 : i32
    %c0_i32_1 = arith.constant 0 : i32
    %c0_i32_2 = arith.constant 0 : i32
    return %c0_i32, %c0_i32_0, %c0_i32_1 : i32, i32, i32
  }
  func.func @transform_4(%arg0: i32) -> (i32, i32, i32) {
    %c0_i32 = arith.constant 0 : i32
    %c0_i32_0 = arith.constant 0 : i32
    %c0_i32_1 = arith.constant 0 : i32
    %c0_i32_2 = arith.constant 0 : i32
    return %c0_i32, %c0_i32_0, %c0_i32_1 : i32, i32, i32
  }
  func.func @transform_5(%arg0: i32) -> (i32, i32, i32) {
    %c0_i32 = arith.constant 0 : i32
    %c0_i32_0 = arith.constant 0 : i32
    %c0_i32_1 = arith.constant 0 : i32
    %c0_i32_2 = arith.constant 0 : i32
    return %c0_i32, %c0_i32_0, %c0_i32_1 : i32, i32, i32
  }
  func.func @transform_6(%arg0: i32) -> (i32, i32, i32) {
    %c0_i32 = arith.constant 0 : i32
    %c0_i32_0 = arith.constant 0 : i32
    %c0_i32_1 = arith.constant 0 : i32
    %c0_i32_2 = arith.constant 0 : i32
    return %c0_i32, %c0_i32_0, %c0_i32_1 : i32, i32, i32
  }
  func.func @transform_7(%arg0: i32) -> (i32, i32, i32) {
    %c0_i32 = arith.constant 0 : i32
    %c0_i32_0 = arith.constant 0 : i32
    %c0_i32_1 = arith.constant 0 : i32
    %c0_i32_2 = arith.constant 0 : i32
    return %c0_i32, %c0_i32_0, %c0_i32_1 : i32, i32, i32
  }
  func.func @transform_8(%arg0: i32) -> (i32, i32, i32) {
    %c0_i32 = arith.constant 0 : i32
    %c0_i32_0 = arith.constant 0 : i32
    %c0_i32_1 = arith.constant 0 : i32
    %c0_i32_2 = arith.constant 0 : i32
    return %c0_i32, %c0_i32_0, %c0_i32_1 : i32, i32, i32
  }
  func.func @transform_9(%arg0: i32) -> (i32, i32) {
    %c0_i32 = arith.constant 0 : i32
    %c0_i32_0 = arith.constant 0 : i32
    %c0_i32_1 = arith.constant 0 : i32
    return %c0_i32, %c0_i32_0 : i32, i32
  }
  func.func @transform_10(%arg0: i32) -> (i32, i32) {
    %c0_i32 = arith.constant 0 : i32
    %c0_i32_0 = arith.constant 0 : i32
    %c0_i32_1 = arith.constant 0 : i32
    return %c0_i32, %c0_i32_0 : i32, i32
  }
}

</mosaic_0001>

<bundles_post_ra>
// kernel: tpu_custom_call.1
= control target key start
LH: loop header
LB: loop body
LE: loop exit
PB: predicated region body
PF: predicated region fallthrough
CT: control target
= control target key end

     0   :  { %s1962_s0 = inlined_call_operand.vmem [shape: f32[16,32], index: 0, kind: input, shape index: {}]   ;;  %s1963_s1 = inlined_call_operand.vmem [shape: f32[16,16], index: 1, kind: input, shape index: {}]   ;;  %s1964_s2 = inlined_call_operand.hbm [shape: f32[4,1,32], index: 2, kind: input, shape index: {}]   ;;  %s1965_s3 = inlined_call_operand.vmem [shape: f32[2,32,96], index: 3, kind: input, shape index: {}]   ;;  %s1966_s4 = inlined_call_operand.vmem [shape: f32[3,32,32], index: 4, kind: input, shape index: {}]   ;;  %s1967_s5 = inlined_call_operand.hbm [shape: f32[2,32,64], index: 5, kind: input, shape index: {}]   ;;  %s1968_s6 = inlined_call_operand.vmem [shape: f32[2,64,32], index: 6, kind: input, shape index: {}]   ;;  %s1969_s7 = inlined_call_operand.vmem [shape: f32[2,1,160], index: 7, kind: input, shape index: {}]   ;;  %s1970_s8 = inlined_call_operand.hbm [shape: f32[12,1,32], index: 8, kind: input, shape index: {}]   ;;  %s1971_s9 = inlined_call_operand.<no memory space> [shape: f32[1,1], index: 9, kind: input, shape index: {}]   ;;  %s1972_s10 = inlined_call_operand.hbm [shape: f32[1,2], index: 10, kind: output, shape index: {}]  }
   0x1   :  { %v15_v0 = vstv %s1971_s9 }
   0x2   :  { %16 = vst [vmem:[#allocation2] sm:$0x1] %v15_v0 }
   0x3   :  { %17 = vsyncpa [#allocation4], 0 }
   0x4   :  { %18 = vsyncpa [#allocation7], 0  ;;  %s45_s17 = sshll.u32 %s1967_s5, 4  ;;  %s46_s17 = int_to_ptr.hbm [resolvable:$true] %s45_s17 }
   0x5   :  { %19 = vsyncpa [#allocation5], 0  ;;  %s1577_s18 = smov [#allocation6]   ;;  %s28_s22 = sshll.u32 %s1964_s2, 4  ;;  %s29_s22 = int_to_ptr.hbm [resolvable:$true] %s28_s22 }
   0x6   :  { %s47_s19 = sshll.u32 %s1577_s18, 4  ;;  %s1578_s23 = smov 128   ;;  %s48_s19 = int_to_ptr.vmem [resolvable:$true] %s47_s19 }
   0x7   :  { %s1579_s24 = smov 8   ;;  %s1580_s9 = smov [#allocation3]  }
   0x8   :  { %53 = dma.hbm_to_vmem [thread:$0]  %s46_s17, 1024, %s48_s19, [#allocation7], %s1578_s23, %s1578_s23, %s1579_s24  }
   0x9   :  { %s30_s25 = sshll.u32 %s1580_s9, 4  ;;  %s1581_s26 = smov 16   ;;  %s31_s25 = int_to_ptr.vmem [resolvable:$true] %s30_s25 }
   0xa   :  { %s1582_s27 = smov 1   ;;  %s62_s29 = sshll.u32 %s1970_s8, 4  ;;  %s63_s29 = int_to_ptr.hbm [resolvable:$true] %s62_s29 }
   0xb   :  { %36 = dma.hbm_to_vmem [thread:$0]  %s29_s22, 64, %s31_s25, [#allocation4], %s1581_s26, %s1581_s26, %s1582_s27  }
   0xc   :  { %s1583_s30 = smov [#allocation8]  }
   0xd   :  { %s64_s11 = sshll.u32 %s1583_s30, 4  ;;  %s65_s11 = int_to_ptr.vmem [resolvable:$true] %s64_s11 }
   0xe   :  { %70 = dma.hbm_to_vmem [thread:$0]  %s63_s29, 192, %s65_s11, [#allocation7], %s1581_s26, %s1581_s26, %s1582_s27  }
   0xf   :  { %1571 = dma.done.wait [#allocation4], 64  }
  0x10   :  { %1572 = vsyncadd [#allocation4], 4294967232 }
  0x11   :  { %1573 = dma.done.wait [#allocation7], 1216  }
  0x12   :  { %1574 = vsyncadd [#allocation7], 4294966080  ;;  %vm90_vm0 = vcmask 261120   ;;  %v85_v1 = vld [vmem:[%s1962_s0] sm:$0xff]  ;;  %v86_v3 = vld [vmem:[%s1962_s0 + $0x8] sm:$0xff]  ;;  %v1584_v5 = vmov 32.0  }
  0x13   :  { %v91_v2 = vsel %vm90_vm0, %v85_v1, 0.0  ;;  %v94_v4 = vsel %vm90_vm0, %v86_v3, 0.0  ;;  %1411 = vrcp.f32 %v1584_v5  ;;  %v158_v22 = vld [vmem:[%s1965_s3 + $0x18] sm:$0xff]  ;;  %v157_v23 = vld [vmem:[%s1965_s3 + $0x10] sm:$0xff]  ;;  %v156_v24 = vld [vmem:[%s1965_s3 + $0x8] sm:$0xff]  ;;  %s1585_s23 = smov 96  }
  0x14   :  { %92 = vadd.xlane.f32.xlu0 %v91_v2  ;;  %180 = vmatpush.msra.mxu0 %v158_v22  ;;  %v155_v25 = vld [vmem:[%s1965_s3] sm:$0xff]  ;;  %vm202_vm8 = vcmask 130048   ;;  %v1722_v2 = vld [vmem:[%s1963_s1 + $0x8] sm:$0xff]  ;;  %s1586_s27 = smov 64   ;;  %s1587_s5 = smov 80   ;;  %vm583_vm15 = vcmask 523264  }
  0x15   :  { %v1396_v40 = vld [vmem:[#allocation3] ss:$0 sm:$0xff]  ;;  %v1397_v44 = vld [vmem:[#allocation3 + $0x1] ss:$0 sm:$0xff]  ;;  %s1588_s28 = smov 112   ;;  %s1589_s2 = smov 48  }
  0x16   :  { %181 = vmatpush.msra.mxu0 %v157_v23  ;;  %v1699_v55 = vld [vmem:[%s1969_s7] sm:$0x3]  ;;  %s1590_s8 = smov 32   ;;  %s1279_s20 = sshll.u32 %s1972_s10, 4  ;;  %s1280_s20 = int_to_ptr.hbm [resolvable:$true] %s1279_s20 }
  0x17   :  { %v1702_v56 = vperm.slane %v1699_v55, 0  ;;  %v1715_v62 = vld [vmem:[%s1963_s1] sm:$0xff] }
  0x18   :  { %182 = vmatpush.msra.mxu0 %v156_v24  ;;  %v192_v24 = vld [vmem:[%s1966_s4 + $0x8] sm:$0xff] }
  0x19   :  { %v1412_v6 = vpop.eup %1411  ;;  %311 = vmatpush.msra.mxu3 %v192_v24 }
  0x1a   :  { %v98_v7 = vmul.f32 32.0, %v1412_v6  ;;  %vm102_vm1 = vweird.f32 %v1412_v6  ;;  %183 = vmatpush.msra.mxu0 %v155_v25 }
  0x1c   :  { %95 = vadd.xlane.f32.xlu0 %v94_v4  ;;  %v99_v8 = vsub.f32 1.0, %v98_v7 }
  0x1e   :  { %v100_v9 = vmul.f32 %v1412_v6, %v99_v8 }
  0x20   :  { %v101_v10 = vadd.f32 %v1412_v6, %v100_v9 }
  0x22   :  { %v1668_v11 = vsel %vm102_vm1, %v1412_v6, %v101_v10 }
  0x87   :  { %v93_v12 = vpop.xlane.xlu0 %92 }
  0x88   :  { %v104_v13 = vmul.f32 %v1668_v11, %v93_v12 }
  0x8a   :  { %v106_v14 = vsub.f32 %v85_v1, %v104_v13 }
  0x8c   :  { %v108_v15 = vmul.f32 %v106_v14, %v106_v14 }
  0x8e   :  { %v110_v16 = vsel %vm90_vm0, %v108_v15, 0.0 }
  0x8f   :  { %111 = vadd.xlane.f32.xlu1 %v110_v16  ;;  %v96_v17 = vpop.xlane.xlu0 %95 }
  0x90   :  { %v105_v18 = vmul.f32 %v1668_v11, %v96_v17 }
  0x92   :  { %v107_v19 = vsub.f32 %v86_v3, %v105_v18 }
  0x94   :  { %v109_v20 = vmul.f32 %v107_v19, %v107_v19 }
  0x96   :  { %v113_v21 = vsel %vm90_vm0, %v109_v20, 0.0 }
  0x97   :  { %114 = vadd.xlane.f32.xlu1 %v113_v21 }
 0x102   :  { %v112_v26 = vpop.xlane.xlu1 %111 }
 0x103   :  { %v116_v27 = vmul.f32 %v112_v26, %v1668_v11 }
 0x105   :  { %v118_v28 = vadd.f32 1e-05, %v116_v27 }
 0x107   :  { %1413 = vrsqrt.f32 %v118_v28  ;;  %vm126_vm3 = vweird.f32 %v118_v28 }
 0x10a   :  { %v115_v29 = vpop.xlane.xlu1 %114 }
 0x10b   :  { %v117_v30 = vmul.f32 %v115_v29, %v1668_v11 }
 0x10d   :  { %v1414_v31 = vpop.eup %1413  ;;  %v119_v32 = vadd.f32 1e-05, %v117_v30 }
 0x10e   :  { %v121_v33 = vmul.f32 %v1414_v31, %v118_v28  ;;  %vm127_vm2 = vweird.f32 %v1414_v31 }
 0x10f   :  { %1415 = vrsqrt.f32 %v119_v32  ;;  %vm128_vm4 = vmor %vm126_vm3, %vm127_vm2  ;;  %vm136_vm6 = vweird.f32 %v119_v32 }
 0x110   :  { %v122_v34 = vmul.f32 %v1414_v31, %v121_v33 }
 0x112   :  { %v123_v35 = vmul.f32 0.5, %v122_v34 }
 0x114   :  { %v124_v36 = vsub.f32 1.5, %v123_v35 }
 0x115   :  { %v1416_v37 = vpop.eup %1415 }
 0x116   :  { %v125_v38 = vmul.f32 %v1414_v31, %v124_v36  ;;  %v131_v39 = vmul.f32 %v1416_v37, %v119_v32  ;;  %vm137_vm5 = vweird.f32 %v1416_v37  ;;  %v191_v32 = vld [vmem:[%s1966_s4] sm:$0xff] }
 0x117   :  { %vm138_vm7 = vmor %vm136_vm6, %vm137_vm5  ;;  %312 = vmatpush.msra.mxu3 %v191_v32 }
 0x118   :  { %v129_v41 = vsel %vm128_vm4, %v1414_v31, %v125_v38  ;;  %v132_v42 = vmul.f32 %v1416_v37, %v131_v39 }
 0x119   :  { %v140_v43 = vmul.f32 %v129_v41, %v106_v14 }
 0x11a   :  { %v133_v45 = vmul.f32 0.5, %v132_v42 }
 0x11b   :  { %v145_v46 = vmul.f32 %v1396_v40, %v140_v43 }
 0x11c   :  { %v134_v47 = vsub.f32 1.5, %v133_v45 }
 0x11d   :  { %v1688_v48 = vadd.f32 %v1397_v44, %v145_v46 }
 0x11e   :  { %v135_v49 = vmul.f32 %v1416_v37, %v134_v47 }
 0x11f   :  { %1290 = vmatmul.msk.f32.vlgmr.msra.gmra.mxu0 %vm90_vm0, %v1688_v48 }
 0x120   :  { %v139_v50 = vsel %vm138_vm7, %v1416_v37, %v135_v49 }
 0x121   :  { %v141_v51 = vmul.f32 %v139_v50, %v107_v19 }
 0x123   :  { %v146_v52 = vmul.f32 %v1396_v40, %v141_v51 }
 0x125   :  { %v1692_v53 = vadd.f32 %v1397_v44, %v146_v52 }
 0x127   :  { %1291 = vmatmul.msk.f32.gmra.mxu0 %vm90_vm0, %v1692_v53 }
 0x19c   :  { %v185_v54 = vpop.f32.mrf.mxu0 }
 0x19d   :  { %v186_v59 = vadd.f32 %v185_v54, %v1702_v56 }
 0x1a4   :  { %v188_v57 = vpop.f32.mrf.mxu0 }
 0x1a5   :  { %v189_v58 = vadd.f32 %v188_v57, %v1702_v56 }
 0x1a7   :  { %200 = vrot.lane.b32.xlu2 %v189_v58, %s1585_s23  ;;  %v1374_v6 = vpack.i.bf16 %v186_v59, %v189_v58 }
 0x1af   :  { %198 = vrot.lane.b32.xlu2 %v186_v59, %s1585_s23 }
 0x201   :  { %v201_v60 = vpop.permute.xlu2 %200 }
 0x202   :  { %1292 = vmatpush.xpose.msk.msra.mxu1 %vm202_vm8, %v201_v60 }
 0x209   :  { %v199_v61 = vpop.permute.xlu2 %198 }
 0x20a   :  { %1293 = vmatpush.xpose.msk.msra.mxu1 %vm202_vm8, %v199_v61 }
 0x20d   :  { %1294 = vmatmul.msk.f32.vlgmr.msra.gmra.mxu1 %vm202_vm8, %v186_v59 }
 0x215   :  { %1295 = vmatmul.msk.f32.gmra.mxu1 %vm202_vm8, %v189_v58 }
 0x28a   :  { %v228_v63 = vpop.f32.mrf.mxu1 }
 0x28b   :  { %v229_v0 = vadd.f32 %v228_v63, %v1715_v62 }
 0x28d   :  { %v234_v1 = vsel %vm202_vm8, %v229_v0, -inf }
 0x28e   :  { %235 = vmax.xlane.f32.xlu0 %v234_v1 }
 0x292   :  { %v231_v3 = vpop.f32.mrf.mxu1 }
 0x293   :  { %v232_v4 = vadd.f32 %v231_v3, %v1722_v2  ;;  %v193_v3 = vld [vmem:[%s1966_s4 + $0x10] sm:$0xff] }
 0x295   :  { %v237_v5 = vsel %vm202_vm8, %v232_v4, -inf }
 0x296   :  { %238 = vmax.xlane.f32.xlu1 %v237_v5 }
 0x2a2   :  { %1375 = vrot.lane.b32.xlu0 %v1374_v6, %s1586_s27 }
 0x2aa   :  { %329 = vrot.lane.b32.xlu0 %v186_v59, %s1587_s5 }
 0x2af   :  { %331 = vrot.lane.b32.xlu1 %v189_v58, %s1587_s5 }
 0x2b2   :  { %325 = vrot.lane.b32.xlu0 %v186_v59, %s1588_s28 }
 0x301   :  { %v236_v7 = vpop.xlane.xlu0 %235 }
 0x302   :  { %v240_v8 = vsub.f32 %v229_v0, %v236_v7 }
 0x304   :  { %v242_v9 = vmul.f32 1.442695, %v240_v8  ;;  %v1398_v8 = vld [vmem:[#allocation8] ss:$0 sm:$0xff] }
 0x306   :  { %1417 = vpow2.f32 %v242_v9 }
 0x309   :  { %v239_v10 = vpop.xlane.xlu1 %238 }
 0x30a   :  { %v241_v12 = vsub.f32 %v232_v4, %v239_v10 }
 0x30c   :  { %v1418_v13 = vpop.eup %1417  ;;  %v244_v14 = vmul.f32 1.442695, %v241_v12 }
 0x30d   :  { %v246_v15 = vsel %vm202_vm8, %v1418_v13, 0.0 }
 0x30e   :  { %1419 = vpow2.f32 %v244_v14  ;;  %247 = vadd.xlane.f32.xlu2 %v246_v15 }
 0x314   :  { %v1420_v16 = vpop.eup %1419  ;;  %v1376_v17 = vpop.permute.xlu0 %1375 }
 0x315   :  { %v249_v18 = vsel %vm202_vm8, %v1420_v16, 0.0  ;;  %v1377_v19 = vunpack.i.l.bf16 %v1376_v17  ;;  %v1378_v20 = vunpack.i.h.bf16 %v1376_v17 }
 0x316   :  { %250 = vadd.xlane.f32.xlu1 %v249_v18 }
 0x317   :  { %282 = vmatpush.msra.mxu2 %v1377_v19 }
 0x319   :  { %283 = vmatpush.msra.mxu2 %v1378_v20 }
 0x31c   :  { %v330_v22 = vpop.permute.xlu0 %329 }
 0x321   :  { %v332_v21 = vpop.permute.xlu1 %331 }
 0x322   :  { %1300 = vmatpush.xpose.msk.msrb.mxu2 %vm202_vm8, %v332_v21 }
 0x324   :  { %v326_v30 = vpop.permute.xlu0 %325 }
 0x326   :  { %1301 = vmatpush.xpose.msk.msrb.mxu2 %vm202_vm8, %v330_v22 }
 0x32f   :  { %327 = vrot.lane.b32.xlu1 %v189_v58, %s1588_s28  ;;  %v194_v58 = vld [vmem:[%s1966_s4 + $0x18] sm:$0xff] }
 0x330   :  { %441 = vmatpush.msrb.mxu0 %v194_v58 }
 0x332   :  { %442 = vmatpush.msrb.mxu0 %v193_v3  ;;  %v575_v3 = vld [vmem:[%s1968_s6 + $0x28] sm:$0xff] }
 0x381   :  { %v248_v23 = vpop.xlane.xlu2 %247 }
 0x382   :  { %1421 = vrcp.f32 %v248_v23 }
 0x388   :  { %v1422_v25 = vpop.eup %1421 }
 0x389   :  { %v251_v26 = vpop.xlane.xlu1 %250  ;;  %v254_v27 = vmul.f32 %v1422_v25, %v1418_v13 }
 0x38a   :  { %1423 = vrcp.f32 %v251_v26 }
 0x38b   :  { %1296 = vmatmul.msk.f32.vlgmr.msra.gmra.mxu2 %vm202_vm8, %v254_v27 }
 0x390   :  { %v1424_v28 = vpop.eup %1423 }
 0x391   :  { %v255_v29 = vmul.f32 %v1424_v28, %v1420_v16 }
 0x393   :  { %1297 = vmatmul.msk.f32.gmra.mxu2 %vm202_vm8, %v255_v29  ;;  %v514_v29 = vld [vmem:[#allocation6 + $0x10] sm:$0xff] }
 0x39b   :  { %1302 = vmatmul.msk.f32.vlgmr.msrb.gmra.mxu2 %vm202_vm8, %v326_v30  ;;  %v513_v30 = vld [vmem:[#allocation6 + $0x8] sm:$0xff] }
 0x3a1   :  { %v328_v31 = vpop.permute.xlu1 %327 }
 0x3a3   :  { %1303 = vmatmul.msk.f32.gmra.mxu2 %vm202_vm8, %v328_v31  ;;  %v512_v31 = vld [vmem:[#allocation6] sm:$0xff] }
 0x40e   :  { %v285_v33 = vpop.f32.mrf.mxu2 }
 0x40f   :  { %1298 = vmatmul.msk.f32.vlgmr.msra.gmra.mxu3 %vm202_vm8, %v285_v33 }
 0x416   :  { %v288_v34 = vpop.f32.mrf.mxu2 }
 0x417   :  { %1299 = vmatmul.msk.f32.gmra.mxu3 %vm202_vm8, %v288_v34 }
 0x41e   :  { %v358_v35 = vpop.f32.mrf.mxu2 }
 0x41f   :  { %v359_v36 = vadd.f32 %v358_v35, %v1715_v62  ;;  %v516_v35 = vperm.slane %v1699_v55, 1 }
 0x421   :  { %v364_v37 = vsel %vm202_vm8, %v359_v36, -inf }
 0x422   :  { %365 = vmax.xlane.f32.xlu2 %v364_v37 }
 0x426   :  { %v361_v38 = vpop.f32.mrf.mxu2 }
 0x427   :  { %v362_v39 = vadd.f32 %v361_v38, %v1722_v2 }
 0x429   :  { %v367_v40 = vsel %vm202_vm8, %v362_v39, -inf }
 0x42a   :  { %368 = vmax.xlane.f32.xlu0 %v367_v40 }
 0x43a   :  { %1380 = vrot.lane.b32.xlu2 %v1374_v6, %s1589_s2 }
 0x492   :  { %v314_v4 = vpop.f32.mrf.mxu3 }
 0x493   :  { %v323_v9 = vadd.f32 %v1398_v8, %v314_v4  ;;  %v574_v4 = vld [vmem:[%s1968_s6 + $0x20] sm:$0xff] }
 0x495   :  { %v366_v41 = vpop.xlane.xlu2 %365 }
 0x496   :  { %v370_v42 = vsub.f32 %v359_v36, %v366_v41 }
 0x498   :  { %v372_v43 = vmul.f32 1.442695, %v370_v42 }
 0x49a   :  { %1425 = vpow2.f32 %v372_v43  ;;  %v317_v5 = vpop.f32.mrf.mxu3 }
 0x49b   :  { %v324_v15 = vadd.f32 %v1398_v8, %v317_v5  ;;  %v573_v5 = vld [vmem:[%s1968_s6 + $0x18] sm:$0xff]  ;;  %v570_v8 = vld [vmem:[%s1968_s6] sm:$0xff] }
 0x49d   :  { %v369_v44 = vpop.xlane.xlu0 %368  ;;  %v1381_v45 = vpop.permute.xlu2 %1380 }
 0x49e   :  { %v371_v46 = vsub.f32 %v362_v39, %v369_v44  ;;  %v1382_v47 = vunpack.i.l.bf16 %v1381_v45  ;;  %v1383_v51 = vunpack.i.h.bf16 %v1381_v45 }
 0x4a0   :  { %v1426_v49 = vpop.eup %1425  ;;  %v374_v50 = vmul.f32 1.442695, %v371_v46  ;;  %412 = vmatpush.msrb.mxu3 %v1382_v47  ;;  %v1399_v46 = vld [vmem:[#allocation8 + $0x1] ss:$0 sm:$0xff] }
 0x4a1   :  { %v376_v52 = vsel %vm202_vm8, %v1426_v49, 0.0 }
 0x4a2   :  { %1427 = vpow2.f32 %v374_v50  ;;  %377 = vadd.xlane.f32.xlu1 %v376_v52  ;;  %413 = vmatpush.msrb.mxu3 %v1383_v51  ;;  %v1400_v50 = vld [vmem:[#allocation8 + $0x2] ss:$0 sm:$0xff] }
 0x4a8   :  { %v1428_v54 = vpop.eup %1427 }
 0x4a9   :  { %v379_v57 = vsel %vm202_vm8, %v1428_v54, 0.0 }
 0x4aa   :  { %380 = vadd.xlane.f32.xlu2 %v379_v57 }
 0x515   :  { %v378_v59 = vpop.xlane.xlu1 %377 }
 0x516   :  { %1429 = vrcp.f32 %v378_v59 }
 0x51c   :  { %v1430_v60 = vpop.eup %1429 }
 0x51d   :  { %v381_v61 = vpop.xlane.xlu2 %380  ;;  %v384_v63 = vmul.f32 %v1430_v60, %v1426_v49 }
 0x51e   :  { %1431 = vrcp.f32 %v381_v61 }
 0x51f   :  { %1304 = vmatmul.msk.f32.vlgmr.msrb.gmra.mxu3 %vm202_vm8, %v384_v63 }
 0x524   :  { %v1432_v0 = vpop.eup %1431 }
 0x525   :  { %v385_v1 = vmul.f32 %v1432_v0, %v1428_v54  ;;  %v577_v0 = vld [vmem:[%s1968_s6 + $0x38] sm:$0xff] }
 0x526   :  { %598 = vmatpush.msra.mxu2 %v577_v0 }
 0x527   :  { %1305 = vmatmul.msk.f32.gmra.mxu3 %vm202_vm8, %v385_v1  ;;  %v576_v1 = vld [vmem:[%s1968_s6 + $0x30] sm:$0xff] }
 0x528   :  { %599 = vmatpush.msra.mxu2 %v576_v1 }
 0x52a   :  { %600 = vmatpush.msra.mxu2 %v575_v3 }
 0x52c   :  { %601 = vmatpush.msra.mxu2 %v574_v4 }
 0x52e   :  { %602 = vmatpush.msra.mxu2 %v573_v5 }
 0x5a2   :  { %v415_v6 = vpop.f32.mrf.mxu3 }
 0x5a3   :  { %1306 = vmatmul.msk.f32.vlgmr.msrb.gmra.mxu0 %vm202_vm8, %v415_v6  ;;  %v572_v6 = vld [vmem:[%s1968_s6 + $0x10] sm:$0xff] }
 0x5a4   :  { %603 = vmatpush.msra.mxu2 %v572_v6 }
 0x5aa   :  { %v418_v7 = vpop.f32.mrf.mxu3 }
 0x5ab   :  { %1307 = vmatmul.msk.f32.gmra.mxu0 %vm202_vm8, %v418_v7  ;;  %v571_v7 = vld [vmem:[%s1968_s6 + $0x8] sm:$0xff] }
 0x5ac   :  { %604 = vmatpush.msra.mxu2 %v571_v7 }
 0x5ae   :  { %605 = vmatpush.msra.mxu2 %v570_v8 }
 0x620   :  { %v444_v10 = vpop.f32.mrf.mxu0 }
 0x621   :  { %v450_v12 = vadd.f32 %v444_v10, %v323_v9 }
 0x623   :  { %v452_v13 = vadd.f32 %v450_v12, %v1688_v48 }
 0x625   :  { %v458_v14 = vsel %vm90_vm0, %v452_v13, 0.0 }
 0x626   :  { %459 = vadd.xlane.f32.xlu0 %v458_v14 }
 0x628   :  { %v447_v16 = vpop.f32.mrf.mxu0 }
 0x629   :  { %v451_v17 = vadd.f32 %v447_v16, %v324_v15 }
 0x62b   :  { %v453_v18 = vadd.f32 %v451_v17, %v1692_v53  ;;  %v515_v53 = vld [vmem:[#allocation6 + $0x18] sm:$0xff] }
 0x62c   :  { %541 = vmatpush.msrb.mxu1 %v515_v53 }
 0x62d   :  { %v461_v19 = vsel %vm90_vm0, %v453_v18, 0.0 }
 0x62e   :  { %462 = vadd.xlane.f32.xlu1 %v461_v19  ;;  %542 = vmatpush.msrb.mxu1 %v514_v29 }
 0x630   :  { %543 = vmatpush.msrb.mxu1 %v513_v30 }
 0x632   :  { %544 = vmatpush.msrb.mxu1 %v512_v31 }
 0x699   :  { %v460_v20 = vpop.xlane.xlu0 %459 }
 0x69a   :  { %v464_v21 = vmul.f32 %v460_v20, %v1668_v11 }
 0x69c   :  { %v466_v22 = vsub.f32 %v452_v13, %v464_v21 }
 0x69e   :  { %v468_v23 = vmul.f32 %v466_v22, %v466_v22 }
 0x6a0   :  { %v470_v24 = vsel %vm90_vm0, %v468_v23, 0.0 }
 0x6a1   :  { %471 = vadd.xlane.f32.xlu0 %v470_v24  ;;  %v463_v48 = vpop.xlane.xlu1 %462 }
 0x6a2   :  { %v465_v25 = vmul.f32 %v463_v48, %v1668_v11 }
 0x6a4   :  { %v467_v26 = vsub.f32 %v453_v18, %v465_v25 }
 0x6a6   :  { %v469_v27 = vmul.f32 %v467_v26, %v467_v26 }
 0x6a8   :  { %v473_v28 = vsel %vm90_vm0, %v469_v27, 0.0 }
 0x6a9   :  { %474 = vadd.xlane.f32.xlu1 %v473_v28 }
 0x6b5   :  { %517 = vrot.lane.b32.xlu0 %v1702_v56, %s1590_s8 }
 0x6c2   :  { %519 = vrot.lane.b32.xlu1 %v516_v35, %s1590_s8 }
 0x714   :  { %v472_v32 = vpop.xlane.xlu0 %471 }
 0x715   :  { %v476_v33 = vmul.f32 %v472_v32, %v1668_v11 }
 0x717   :  { %v478_v34 = vadd.f32 1e-05, %v476_v33  ;;  %v1401_v33 = vld [vmem:[#allocation8 + $0x3] ss:$0 sm:$0xff] }
 0x719   :  { %1433 = vrsqrt.f32 %v478_v34  ;;  %vm486_vm10 = vweird.f32 %v478_v34 }
 0x71c   :  { %v475_v36 = vpop.xlane.xlu1 %474 }
 0x71d   :  { %v477_v56 = vmul.f32 %v475_v36, %v1668_v11 }
 0x71f   :  { %v1434_v37 = vpop.eup %1433  ;;  %v479_v38 = vadd.f32 1e-05, %v477_v56 }
 0x720   :  { %v481_v39 = vmul.f32 %v1434_v37, %v478_v34  ;;  %vm487_vm9 = vweird.f32 %v1434_v37 }
 0x721   :  { %1435 = vrsqrt.f32 %v479_v38  ;;  %vm488_vm11 = vmor %vm486_vm10, %vm487_vm9  ;;  %vm496_vm13 = vweird.f32 %v479_v38 }
 0x722   :  { %v482_v40 = vmul.f32 %v1434_v37, %v481_v39 }
 0x724   :  { %v483_v41 = vmul.f32 0.5, %v482_v40 }
 0x726   :  { %v484_v42 = vsub.f32 1.5, %v483_v41 }
 0x727   :  { %v1436_v43 = vpop.eup %1435  ;;  %v518_v9 = vpop.permute.xlu0 %517 }
 0x728   :  { %v485_v44 = vmul.f32 %v1434_v37, %v484_v42  ;;  %v491_v45 = vmul.f32 %v1436_v43, %v479_v38  ;;  %vm497_vm12 = vweird.f32 %v1436_v43 }
 0x729   :  { %vm498_vm14 = vmor %vm496_vm13, %vm497_vm12 }
 0x72a   :  { %v489_v55 = vsel %vm488_vm11, %v1434_v37, %v485_v44  ;;  %v492_v47 = vmul.f32 %v1436_v43, %v491_v45 }
 0x72b   :  { %v500_v49 = vmul.f32 %v489_v55, %v466_v22 }
 0x72c   :  { %v493_v51 = vmul.f32 0.5, %v492_v47 }
 0x72d   :  { %v505_v52 = vmul.f32 %v1399_v46, %v500_v49 }
 0x72e   :  { %v494_v54 = vsub.f32 1.5, %v493_v51  ;;  %v1316_v51 = vld [vmem:[%s1965_s3 + $0x38] sm:$0xff] }
 0x72f   :  { %v510_v57 = vadd.f32 %v1400_v50, %v505_v52  ;;  %701 = vmatpush.msra.mxu3 %v1316_v51  ;;  %v1315_v52 = vld [vmem:[%s1965_s3 + $0x30] sm:$0xff] }
 0x730   :  { %v495_v58 = vmul.f32 %v1436_v43, %v494_v54  ;;  %v1314_v54 = vld [vmem:[%s1965_s3 + $0x28] sm:$0xff] }
 0x731   :  { %1308 = vmatmul.msk.f32.vlgmr.msrb.gmra.mxu1 %vm90_vm0, %v510_v57  ;;  %702 = vmatpush.msra.mxu3 %v1315_v52 }
 0x732   :  { %v499_v59 = vsel %vm498_vm14, %v1436_v43, %v495_v58 }
 0x733   :  { %v501_v60 = vmul.f32 %v499_v59, %v467_v26  ;;  %703 = vmatpush.msra.mxu3 %v1314_v54 }
 0x734   :  { %v520_v10 = vpop.permute.xlu1 %519 }
 0x735   :  { %v506_v61 = vmul.f32 %v1399_v46, %v501_v60  ;;  %v521_v12 = vsel %vm90_vm0, %v518_v9, %v520_v10  ;;  %v1402_v10 = vld [vmem:[#allocation8 + $0x4] ss:$0 sm:$0xff] }
 0x737   :  { %v511_v63 = vadd.f32 %v1400_v50, %v506_v61 }
 0x739   :  { %1309 = vmatmul.msk.f32.gmra.mxu1 %vm90_vm0, %v511_v63 }
 0x7ae   :  { %v546_v13 = vpop.f32.mrf.mxu1 }
 0x7af   :  { %v547_v14 = vadd.f32 %v546_v13, %v521_v12 }
 0x7b1   :  { %v552_v15 = vmul.f32 %v547_v14, %v547_v14 }
 0x7b3   :  { %v554_v16 = vmul.f32 %v552_v15, %v547_v14  ;;  %v1403_v15 = vld [vmem:[#allocation8 + $0x5] ss:$0 sm:$0xff] }
 0x7b5   :  { %v556_v17 = vmul.f32 0.044715, %v554_v16 }
 0x7b6   :  { %v549_v18 = vpop.f32.mrf.mxu1 }
 0x7b7   :  { %v558_v19 = vadd.f32 %v556_v17, %v547_v14  ;;  %v550_v20 = vadd.f32 %v549_v18, %v521_v12 }
 0x7b9   :  { %v560_v21 = vmul.f32 0.7978846, %v558_v19  ;;  %v553_v22 = vmul.f32 %v550_v20, %v550_v20 }
 0x7bb   :  { %1437 = vtanh.f32 %v560_v21  ;;  %v555_v23 = vmul.f32 %v553_v22, %v550_v20 }
 0x7bd   :  { %v557_v24 = vmul.f32 0.044715, %v555_v23 }
 0x7bf   :  { %v559_v48 = vadd.f32 %v557_v24, %v550_v20 }
 0x7c1   :  { %v1438_v25 = vpop.eup %1437  ;;  %v561_v26 = vmul.f32 0.7978846, %v559_v48 }
 0x7c2   :  { %v564_v27 = vadd.f32 1.0, %v1438_v25  ;;  %v1838_v25 = vld [vmem:[%s1969_s7 + $0x2] sm:$0x3] }
 0x7c3   :  { %1439 = vtanh.f32 %v561_v26  ;;  %v1841_v26 = vperm.slane %v1838_v25, 0 }
 0x7c4   :  { %v566_v28 = vmul.f32 0.5, %v564_v27 }
 0x7c6   :  { %v568_v53 = vmul.f32 %v566_v28, %v547_v14 }
 0x7c8   :  { %1310 = vmatmul.msk.f32.vlgmr.msra.gmra.mxu2 %vm583_vm15, %v568_v53 }
 0x7c9   :  { %v1440_v29 = vpop.eup %1439 }
 0x7ca   :  { %v565_v30 = vadd.f32 1.0, %v1440_v29 }
 0x7cc   :  { %v567_v31 = vmul.f32 0.5, %v565_v30 }
 0x7ce   :  { %v569_v32 = vmul.f32 %v567_v31, %v550_v20 }
 0x7d0   :  { %1311 = vmatmul.msk.f32.gmra.mxu2 %vm583_vm15, %v569_v32 }
 0x84b   :  { %v607_v34 = vpop.f32.mrf.mxu2 }
 0x84c   :  { %v608_v35 = vadd.f32 %v1401_v33, %v607_v34 }
 0x84e   :  { %v613_v36 = vadd.f32 %v608_v35, %v510_v57  ;;  %v1313_v57 = vld [vmem:[%s1965_s3 + $0x20] sm:$0xff] }
 0x84f   :  { %704 = vmatpush.msra.mxu3 %v1313_v57 }
 0x850   :  { %v619_v56 = vsel %vm90_vm0, %v613_v36, 0.0 }
 0x851   :  { %620 = vadd.xlane.f32.xlu2 %v619_v56 }
 0x853   :  { %v610_v37 = vpop.f32.mrf.mxu2 }
 0x854   :  { %v611_v38 = vadd.f32 %v1401_v33, %v610_v37 }
 0x856   :  { %v614_v39 = vadd.f32 %v611_v38, %v511_v63 }
 0x858   :  { %v622_v40 = vsel %vm90_vm0, %v614_v39, 0.0 }
 0x859   :  { %623 = vadd.xlane.f32.xlu0 %v622_v40 }
 0x8c4   :  { %v621_v41 = vpop.xlane.xlu2 %620 }
 0x8c5   :  { %v625_v42 = vmul.f32 %v621_v41, %v1668_v11 }
 0x8c7   :  { %v627_v43 = vsub.f32 %v613_v36, %v625_v42 }
 0x8c9   :  { %v629_v44 = vmul.f32 %v627_v43, %v627_v43 }
 0x8cb   :  { %v631_v45 = vsel %vm90_vm0, %v629_v44, 0.0 }
 0x8cc   :  { %v624_v46 = vpop.xlane.xlu0 %623  ;;  %632 = vadd.xlane.f32.xlu2 %v631_v45 }
 0x8cd   :  { %v626_v55 = vmul.f32 %v624_v46, %v1668_v11 }
 0x8cf   :  { %v628_v47 = vsub.f32 %v614_v39, %v626_v55 }
 0x8d1   :  { %v630_v49 = vmul.f32 %v628_v47, %v628_v47 }
 0x8d3   :  { %v634_v50 = vsel %vm90_vm0, %v630_v49, 0.0 }
 0x8d4   :  { %635 = vadd.xlane.f32.xlu2 %v634_v50 }
 0x93f   :  { %v633_v58 = vpop.xlane.xlu2 %632 }
 0x940   :  { %v637_v59 = vmul.f32 %v633_v58, %v1668_v11 }
 0x942   :  { %v639_v60 = vadd.f32 1e-05, %v637_v59 }
 0x944   :  { %1441 = vrsqrt.f32 %v639_v60  ;;  %vm647_vm2 = vweird.f32 %v639_v60 }
 0x947   :  { %v636_v61 = vpop.xlane.xlu2 %635 }
 0x948   :  { %v638_v63 = vmul.f32 %v636_v61, %v1668_v11 }
 0x94a   :  { %v1442_v0 = vpop.eup %1441  ;;  %v640_v1 = vadd.f32 1e-05, %v638_v63 }
 0x94b   :  { %v642_v3 = vmul.f32 %v1442_v0, %v639_v60  ;;  %vm648_vm1 = vweird.f32 %v1442_v0 }
 0x94c   :  { %1443 = vrsqrt.f32 %v640_v1  ;;  %vm649_vm3 = vmor %vm647_vm2, %vm648_vm1  ;;  %vm657_vm5 = vweird.f32 %v640_v1 }
 0x94d   :  { %v643_v4 = vmul.f32 %v1442_v0, %v642_v3 }
 0x94f   :  { %v644_v5 = vmul.f32 0.5, %v643_v4 }
 0x951   :  { %v645_v6 = vsub.f32 1.5, %v644_v5 }
 0x952   :  { %v1444_v7 = vpop.eup %1443 }
 0x953   :  { %v646_v8 = vmul.f32 %v1442_v0, %v645_v6  ;;  %v652_v9 = vmul.f32 %v1444_v7, %v640_v1  ;;  %vm658_vm4 = vweird.f32 %v1444_v7 }
 0x954   :  { %vm659_vm6 = vmor %vm657_vm5, %vm658_vm4  ;;  %vm1199_vm4 = vcmask 1040384   ;;  %vm1270_vm5 = vcmask 8192  }
 0x955   :  { %v650_v12 = vsel %vm649_vm3, %v1442_v0, %v646_v8  ;;  %v653_v13 = vmul.f32 %v1444_v7, %v652_v9 }
 0x956   :  { %v661_v14 = vmul.f32 %v650_v12, %v627_v43 }
 0x957   :  { %v654_v16 = vmul.f32 0.5, %v653_v13 }
 0x958   :  { %v666_v17 = vmul.f32 %v1402_v10, %v661_v14  ;;  %v1320_v14 = vld [vmem:[%s1966_s4 + $0x28] sm:$0xff] }
 0x959   :  { %v655_v18 = vsub.f32 1.5, %v654_v16  ;;  %833 = vmatpush.msrb.mxu2 %v1320_v14 }
 0x95a   :  { %v1827_v19 = vadd.f32 %v1403_v15, %v666_v17 }
 0x95b   :  { %v656_v20 = vmul.f32 %v1444_v7, %v655_v18 }
 0x95c   :  { %1317 = vmatmul.msk.f32.vlgmr.msra.gmra.mxu3 %vm90_vm0, %v1827_v19 }
 0x95d   :  { %v660_v21 = vsel %vm659_vm6, %v1444_v7, %v656_v20 }
 0x95e   :  { %v662_v22 = vmul.f32 %v660_v21, %v628_v47 }
 0x960   :  { %v667_v23 = vmul.f32 %v1402_v10, %v662_v22 }
 0x962   :  { %v1831_v24 = vadd.f32 %v1403_v15, %v667_v23 }
 0x964   :  { %1318 = vmatmul.msk.f32.gmra.mxu3 %vm90_vm0, %v1831_v24 }
 0x9df   :  { %v706_v48 = vpop.f32.mrf.mxu3 }
 0x9e0   :  { %v707_v53 = vadd.f32 %v706_v48, %v1841_v26 }
 0x9e7   :  { %v709_v27 = vpop.f32.mrf.mxu3 }
 0x9e8   :  { %v710_v28 = vadd.f32 %v709_v27, %v1841_v26 }
 0x9ea   :  { %853 = vrot.lane.b32.xlu2 %v710_v28, %s1587_s5  ;;  %723 = vrot.lane.b32.xlu1 %v710_v28, %s1585_s23  ;;  %v1389_v46 = vpack.i.bf16 %v707_v53, %v710_v28 }
 0x9f2   :  { %849 = vrot.lane.b32.xlu2 %v710_v28, %s1588_s28  ;;  %721 = vrot.lane.b32.xlu1 %v707_v53, %s1585_s23 }
 0x9fa   :  { %851 = vrot.lane.b32.xlu1 %v707_v53, %s1587_s5 }
 0xa02   :  { %847 = vrot.lane.b32.xlu1 %v707_v53, %s1588_s28 }
 0xa44   :  { %v854_v29 = vpop.permute.xlu2 %853 }
 0xa45   :  { %1331 = vmatpush.xpose.msk.msrb.mxu3 %vm202_vm8, %v854_v29  ;;  %v1322_v29 = vld [vmem:[%s1966_s4 + $0x38] sm:$0xff] }
 0xa4c   :  { %v850_v34 = vpop.permute.xlu2 %849 }
 0xa5c   :  { %v724_v30 = vpop.permute.xlu1 %723 }
 0xa5d   :  { %1323 = vmatpush.xpose.msk.msra.mxu0 %vm202_vm8, %v724_v30  ;;  %v1321_v30 = vld [vmem:[%s1966_s4 + $0x30] sm:$0xff] }
 0xa64   :  { %v722_v31 = vpop.permute.xlu1 %721 }
 0xa65   :  { %1324 = vmatpush.xpose.msk.msra.mxu0 %vm202_vm8, %v722_v31 }
 0xa68   :  { %1325 = vmatmul.msk.f32.vlgmr.msra.gmra.mxu0 %vm202_vm8, %v707_v53  ;;  %v1319_v53 = vld [vmem:[%s1966_s4 + $0x20] sm:$0xff] }
 0xa69   :  { %834 = vmatpush.msrb.mxu2 %v1319_v53  ;;  %v1348_v53 = vld [vmem:[%s1968_s6 + $0x78] sm:$0xff] }
 0xa6c   :  { %v852_v32 = vpop.permute.xlu1 %851 }
 0xa6d   :  { %1332 = vmatpush.xpose.msk.msrb.mxu3 %vm202_vm8, %v852_v32 }
 0xa70   :  { %1326 = vmatmul.msk.f32.gmra.mxu0 %vm202_vm8, %v710_v28 }
 0xa71   :  { %1121 = vmatpush.msra.mxu3 %v1348_v53 }
 0xa74   :  { %v848_v33 = vpop.permute.xlu1 %847 }
 0xa75   :  { %1333 = vmatmul.msk.f32.vlgmr.msrb.gmra.mxu3 %vm202_vm8, %v848_v33 }
 0xa7d   :  { %1334 = vmatmul.msk.f32.gmra.mxu3 %vm202_vm8, %v850_v34 }
 0xae5   :  { %v750_v35 = vpop.f32.mrf.mxu0 }
 0xae6   :  { %v751_v36 = vadd.f32 %v750_v35, %v1715_v62 }
 0xae8   :  { %v756_v56 = vsel %vm202_vm8, %v751_v36, -inf }
 0xae9   :  { %757 = vmax.xlane.f32.xlu0 %v756_v56 }
 0xaed   :  { %v753_v37 = vpop.f32.mrf.mxu0 }
 0xaee   :  { %v754_v38 = vadd.f32 %v753_v37, %v1722_v2 }
 0xaf0   :  { %v759_v39 = vsel %vm202_vm8, %v754_v38, -inf }
 0xaf1   :  { %760 = vmax.xlane.f32.xlu1 %v759_v39 }
 0xaf8   :  { %v880_v40 = vpop.f32.mrf.mxu3 }
 0xaf9   :  { %v881_v41 = vadd.f32 %v880_v40, %v1715_v62 }
 0xafb   :  { %v886_v42 = vsel %vm202_vm8, %v881_v41, -inf }
 0xafc   :  { %887 = vmax.xlane.f32.xlu2 %v886_v42 }
 0xb00   :  { %v883_v43 = vpop.f32.mrf.mxu3 }
 0xb01   :  { %v884_v44 = vadd.f32 %v883_v43, %v1722_v2 }
 0xb03   :  { %v889_v45 = vsel %vm202_vm8, %v884_v44, -inf }
 0xb04   :  { %890 = vmax.xlane.f32.xlu0 %v889_v45 }
 0xb14   :  { %1390 = vrot.lane.b32.xlu2 %v1389_v46, %s1589_s2 }
 0xb18   :  { %1385 = vrot.lane.b32.xlu0 %v1389_v46, %s1586_s27 }
 0xb5c   :  { %v758_v55 = vpop.xlane.xlu0 %757 }
 0xb5d   :  { %v762_v47 = vsub.f32 %v751_v36, %v758_v55  ;;  %v1404_v36 = vld [vmem:[#allocation8 + $0x6] ss:$0 sm:$0xff] }
 0xb5f   :  { %v764_v49 = vmul.f32 1.442695, %v762_v47 }
 0xb61   :  { %1445 = vpow2.f32 %v764_v49 }
 0xb64   :  { %v761_v50 = vpop.xlane.xlu1 %760 }
 0xb65   :  { %v763_v62 = vsub.f32 %v754_v38, %v761_v50 }
 0xb67   :  { %v1446_v51 = vpop.eup %1445  ;;  %v766_v52 = vmul.f32 1.442695, %v763_v62 }
 0xb68   :  { %v768_v54 = vsel %vm202_vm8, %v1446_v51, 0.0 }
 0xb69   :  { %1447 = vpow2.f32 %v766_v52  ;;  %769 = vadd.xlane.f32.xlu0 %v768_v54 }
 0xb6f   :  { %v1448_v2 = vpop.eup %1447  ;;  %v888_v57 = vpop.xlane.xlu2 %887 }
 0xb70   :  { %v892_v58 = vsub.f32 %v881_v41, %v888_v57  ;;  %v771_v59 = vsel %vm202_vm8, %v1448_v2, 0.0  ;;  %v1037_v57 = vld [vmem:[#allocation6 + $0x30] sm:$0xff] }
 0xb71   :  { %772 = vadd.xlane.f32.xlu1 %v771_v59  ;;  %v1035_v59 = vld [vmem:[#allocation6 + $0x20] sm:$0xff] }
 0xb72   :  { %v894_v60 = vmul.f32 1.442695, %v892_v58  ;;  %v1036_v58 = vld [vmem:[#allocation6 + $0x28] sm:$0xff] }
 0xb74   :  { %1449 = vpow2.f32 %v894_v60 }
 0xb77   :  { %v891_v61 = vpop.xlane.xlu0 %890  ;;  %v1391_v63 = vpop.permute.xlu2 %1390 }
 0xb78   :  { %v893_v0 = vsub.f32 %v884_v44, %v891_v61  ;;  %v1392_v1 = vunpack.i.l.bf16 %v1391_v63  ;;  %v1393_v5 = vunpack.i.h.bf16 %v1391_v63 }
 0xb7a   :  { %v1450_v3 = vpop.eup %1449  ;;  %v896_v4 = vmul.f32 1.442695, %v893_v0  ;;  %934 = vmatpush.msrb.mxu0 %v1392_v1  ;;  %v1039_v0 = vperm.slane %v1838_v25, 1 }
 0xb7b   :  { %v898_v6 = vsel %vm202_vm8, %v1450_v3, 0.0 }
 0xb7c   :  { %1451 = vpow2.f32 %v896_v4  ;;  %899 = vadd.xlane.f32.xlu0 %v898_v6  ;;  %935 = vmatpush.msrb.mxu0 %v1393_v5 }
 0xb82   :  { %v1452_v7 = vpop.eup %1451 }
 0xb83   :  { %v901_v8 = vsel %vm202_vm8, %v1452_v7, 0.0 }
 0xb84   :  { %902 = vadd.xlane.f32.xlu1 %v901_v8 }
 0xb8a   :  { %v1386_v9 = vpop.permute.xlu0 %1385 }
 0xb8b   :  { %v1387_v10 = vunpack.i.l.bf16 %v1386_v9  ;;  %v1388_v12 = vunpack.i.h.bf16 %v1386_v9 }
 0xb8d   :  { %804 = vmatpush.msra.mxu1 %v1387_v10 }
 0xb8f   :  { %805 = vmatpush.msra.mxu1 %v1388_v12 }
 0xb90   :  { %1042 = vrot.lane.b32.xlu0 %v1039_v0, %s1590_s8 }
 0xb91   :  { %963 = vmatpush.msrb.mxu1 %v1322_v29  ;;  %v1347_v29 = vld [vmem:[%s1968_s6 + $0x70] sm:$0xff] }
 0xb92   :  { %1122 = vmatpush.msra.mxu3 %v1347_v29 }
 0xb93   :  { %964 = vmatpush.msrb.mxu1 %v1321_v30  ;;  %v1346_v30 = vld [vmem:[%s1968_s6 + $0x68] sm:$0xff] }
 0xb94   :  { %1123 = vmatpush.msra.mxu3 %v1346_v30 }
 0xbdc   :  { %v770_v13 = vpop.xlane.xlu0 %769 }
 0xbdd   :  { %1453 = vrcp.f32 %v770_v13  ;;  %v1405_v13 = vld [vmem:[#allocation8 + $0x7] ss:$0 sm:$0xff] }
 0xbe3   :  { %v1454_v15 = vpop.eup %1453 }
 0xbe4   :  { %v776_v16 = vmul.f32 %v1454_v15, %v1446_v51  ;;  %v773_v17 = vpop.xlane.xlu1 %772 }
 0xbe5   :  { %1455 = vrcp.f32 %v773_v17 }
 0xbe6   :  { %1327 = vmatmul.msk.f32.vlgmr.msra.gmra.mxu1 %vm202_vm8, %v776_v16  ;;  %v1406_v16 = vld [vmem:[#allocation8 + $0x8] ss:$0 sm:$0xff] }
 0xbeb   :  { %v1456_v18 = vpop.eup %1455 }
 0xbec   :  { %v777_v20 = vmul.f32 %v1456_v18, %v1448_v2 }
 0xbee   :  { %1328 = vmatmul.msk.f32.gmra.mxu1 %vm202_vm8, %v777_v20 }
 0xbef   :  { %v900_v21 = vpop.xlane.xlu0 %899 }
 0xbf0   :  { %1457 = vrcp.f32 %v900_v21 }
 0xbf6   :  { %v1458_v22 = vpop.eup %1457 }
 0xbf7   :  { %v906_v23 = vmul.f32 %v1458_v22, %v1450_v3  ;;  %v903_v48 = vpop.xlane.xlu1 %902 }
 0xbf8   :  { %1459 = vrcp.f32 %v903_v48 }
 0xbf9   :  { %1335 = vmatmul.msk.f32.vlgmr.msrb.gmra.mxu0 %vm202_vm8, %v906_v23 }
 0xbfe   :  { %v1460_v27 = vpop.eup %1459 }
 0xbff   :  { %v907_v28 = vmul.f32 %v1460_v27, %v1452_v7 }
 0xc01   :  { %1336 = vmatmul.msk.f32.gmra.mxu0 %vm202_vm8, %v907_v28 }
 0xc63   :  { %v807_v31 = vpop.f32.mrf.mxu1 }
 0xc64   :  { %1329 = vmatmul.msk.f32.vlgmr.msrb.gmra.mxu2 %vm202_vm8, %v807_v31  ;;  %v1345_v31 = vld [vmem:[%s1968_s6 + $0x60] sm:$0xff] }
 0xc65   :  { %1124 = vmatpush.msra.mxu3 %v1345_v31 }
 0xc6b   :  { %v810_v32 = vpop.f32.mrf.mxu1 }
 0xc6c   :  { %1330 = vmatmul.msk.f32.gmra.mxu2 %vm202_vm8, %v810_v32  ;;  %v1344_v32 = vld [vmem:[%s1968_s6 + $0x58] sm:$0xff] }
 0xc6d   :  { %1125 = vmatpush.msra.mxu3 %v1344_v32 }
 0xc76   :  { %v937_v33 = vpop.f32.mrf.mxu0 }
 0xc77   :  { %1337 = vmatmul.msk.f32.vlgmr.msrb.gmra.mxu1 %vm202_vm8, %v937_v33  ;;  %v1343_v33 = vld [vmem:[%s1968_s6 + $0x50] sm:$0xff] }
 0xc78   :  { %1126 = vmatpush.msra.mxu3 %v1343_v33 }
 0xc7e   :  { %v940_v34 = vpop.f32.mrf.mxu0 }
 0xc7f   :  { %1338 = vmatmul.msk.f32.gmra.mxu1 %vm202_vm8, %v940_v34  ;;  %v1342_v34 = vld [vmem:[%s1968_s6 + $0x48] sm:$0xff] }
 0xc80   :  { %1127 = vmatpush.msra.mxu3 %v1342_v34 }
 0xce7   :  { %v836_v35 = vpop.f32.mrf.mxu2 }
 0xce8   :  { %v845_v56 = vadd.f32 %v1404_v36, %v836_v35  ;;  %v1341_v35 = vld [vmem:[%s1968_s6 + $0x40] sm:$0xff] }
 0xce9   :  { %1128 = vmatpush.msra.mxu3 %v1341_v35 }
 0xcef   :  { %v839_v40 = vpop.f32.mrf.mxu2 }
 0xcf0   :  { %v846_v42 = vadd.f32 %v1404_v36, %v839_v40  ;;  %v1043_v36 = vpop.permute.xlu0 %1042 }
 0xcf4   :  { %v966_v37 = vpop.f32.mrf.mxu1 }
 0xcf5   :  { %v972_v38 = vadd.f32 %v966_v37, %v845_v56 }
 0xcf7   :  { %v974_v39 = vadd.f32 %v972_v38, %v1827_v19 }
 0xcf9   :  { %v980_v41 = vsel %vm90_vm0, %v974_v39, 0.0 }
 0xcfa   :  { %981 = vadd.xlane.f32.xlu1 %v980_v41 }
 0xcfc   :  { %v969_v43 = vpop.f32.mrf.mxu1 }
 0xcfd   :  { %v973_v44 = vadd.f32 %v969_v43, %v846_v42 }
 0xcff   :  { %v975_v45 = vadd.f32 %v973_v44, %v1831_v24  ;;  %v1038_v24 = vld [vmem:[#allocation6 + $0x38] sm:$0xff] }
 0xd00   :  { %1064 = vmatpush.msra.mxu2 %v1038_v24 }
 0xd01   :  { %v983_v46 = vsel %vm90_vm0, %v975_v45, 0.0 }
 0xd02   :  { %984 = vadd.xlane.f32.xlu1 %v983_v46  ;;  %1065 = vmatpush.msra.mxu2 %v1037_v57 }
 0xd04   :  { %1066 = vmatpush.msra.mxu2 %v1036_v58 }
 0xd06   :  { %1067 = vmatpush.msra.mxu2 %v1035_v59  ;;  %v1407_v59 = vld [vmem:[#allocation8 + $0x9] ss:$0 sm:$0xff] }
 0xd6d   :  { %v982_v55 = vpop.xlane.xlu1 %981 }
 0xd6e   :  { %v986_v47 = vmul.f32 %v982_v55, %v1668_v11 }
 0xd70   :  { %v988_v49 = vsub.f32 %v974_v39, %v986_v47 }
 0xd72   :  { %v990_v50 = vmul.f32 %v988_v49, %v988_v49 }
 0xd74   :  { %v992_v62 = vsel %vm90_vm0, %v990_v50, 0.0 }
 0xd75   :  { %993 = vadd.xlane.f32.xlu2 %v992_v62  ;;  %v985_v19 = vpop.xlane.xlu1 %984 }
 0xd76   :  { %v987_v51 = vmul.f32 %v985_v19, %v1668_v11 }
 0xd78   :  { %v989_v52 = vsub.f32 %v975_v45, %v987_v51 }
 0xd7a   :  { %v991_v54 = vmul.f32 %v989_v52, %v989_v52 }
 0xd7c   :  { %v995_v2 = vsel %vm90_vm0, %v991_v54, 0.0 }
 0xd7d   :  { %996 = vadd.xlane.f32.xlu1 %v995_v2 }
 0xd96   :  { %1040 = vrot.lane.b32.xlu1 %v1841_v26, %s1590_s8 }
 0xde8   :  { %v994_v60 = vpop.xlane.xlu2 %993 }
 0xde9   :  { %v998_v61 = vmul.f32 %v994_v60, %v1668_v11 }
 0xdeb   :  { %v1000_v63 = vadd.f32 1e-05, %v998_v61 }
 0xded   :  { %1461 = vrsqrt.f32 %v1000_v63  ;;  %vm1008_vm8 = vweird.f32 %v1000_v63 }
 0xdf0   :  { %v997_v1 = vpop.xlane.xlu1 %996 }
 0xdf1   :  { %v999_v26 = vmul.f32 %v997_v1, %v1668_v11 }
 0xdf3   :  { %v1462_v3 = vpop.eup %1461  ;;  %v1001_v4 = vadd.f32 1e-05, %v999_v26 }
 0xdf4   :  { %v1003_v5 = vmul.f32 %v1462_v3, %v1000_v63  ;;  %vm1009_vm7 = vweird.f32 %v1462_v3 }
 0xdf5   :  { %1463 = vrsqrt.f32 %v1001_v4  ;;  %vm1010_vm9 = vmor %vm1008_vm8, %vm1009_vm7  ;;  %vm1018_vm11 = vweird.f32 %v1001_v4 }
 0xdf6   :  { %v1004_v6 = vmul.f32 %v1462_v3, %v1003_v5 }
 0xdf8   :  { %v1005_v7 = vmul.f32 0.5, %v1004_v6 }
 0xdfa   :  { %v1006_v8 = vsub.f32 1.5, %v1005_v7 }
 0xdfb   :  { %v1464_v9 = vpop.eup %1463 }
 0xdfc   :  { %v1007_v10 = vmul.f32 %v1462_v3, %v1006_v8  ;;  %v1013_v12 = vmul.f32 %v1464_v9, %v1001_v4  ;;  %vm1019_vm10 = vweird.f32 %v1464_v9 }
 0xdfd   :  { %vm1020_vm12 = vmor %vm1018_vm11, %vm1019_vm10 }
 0xdfe   :  { %v1011_v25 = vsel %vm1010_vm9, %v1462_v3, %v1007_v10  ;;  %v1014_v14 = vmul.f32 %v1464_v9, %v1013_v12 }
 0xdff   :  { %v1022_v15 = vmul.f32 %v1011_v25, %v988_v49 }
 0xe00   :  { %v1015_v17 = vmul.f32 0.5, %v1014_v14 }
 0xe01   :  { %v1027_v18 = vmul.f32 %v1405_v13, %v1022_v15  ;;  %v1354_v15 = vld [vmem:[%s1966_s4 + $0x58] sm:$0xff] }
 0xe02   :  { %v1016_v20 = vsub.f32 1.5, %v1015_v17  ;;  %1226 = vmatpush.msra.mxu0 %v1354_v15  ;;  %v1353_v17 = vld [vmem:[%s1966_s4 + $0x50] sm:$0xff] }
 0xe03   :  { %v1032_v21 = vadd.f32 %v1406_v16, %v1027_v18 }
 0xe04   :  { %v1017_v22 = vmul.f32 %v1464_v9, %v1016_v20  ;;  %1227 = vmatpush.msra.mxu0 %v1353_v17  ;;  %v1352_v20 = vld [vmem:[%s1966_s4 + $0x48] sm:$0xff] }
 0xe05   :  { %1339 = vmatmul.msk.f32.vlgmr.msra.gmra.mxu2 %vm90_vm0, %v1032_v21 }
 0xe06   :  { %v1021_v23 = vsel %vm1020_vm12, %v1464_v9, %v1017_v22  ;;  %1228 = vmatpush.msra.mxu0 %v1352_v20 }
 0xe07   :  { %v1023_v48 = vmul.f32 %v1021_v23, %v989_v52 }
 0xe08   :  { %v1041_v56 = vpop.permute.xlu1 %1040 }
 0xe09   :  { %v1028_v27 = vmul.f32 %v1405_v13, %v1023_v48  ;;  %v1044_v37 = vsel %vm90_vm0, %v1041_v56, %v1043_v36  ;;  %v1408_v56 = vld [vmem:[#allocation8 + $0xa] ss:$0 sm:$0xff] }
 0xe0b   :  { %v1033_v28 = vadd.f32 %v1406_v16, %v1028_v27 }
 0xe0d   :  { %1340 = vmatmul.msk.f32.gmra.mxu2 %vm90_vm0, %v1033_v28 }
 0xe88   :  { %v1069_v38 = vpop.f32.mrf.mxu2 }
 0xe89   :  { %v1070_v39 = vadd.f32 %v1069_v38, %v1044_v37 }
 0xe8b   :  { %v1075_v40 = vmul.f32 %v1070_v39, %v1070_v39 }
 0xe8d   :  { %v1077_v41 = vmul.f32 %v1075_v40, %v1070_v39  ;;  %v1409_v40 = vld [vmem:[#allocation8 + $0xb] ss:$0 sm:$0xff] }
 0xe8f   :  { %v1079_v42 = vmul.f32 0.044715, %v1077_v41 }
 0xe90   :  { %v1072_v43 = vpop.f32.mrf.mxu2 }
 0xe91   :  { %v1081_v44 = vadd.f32 %v1079_v42, %v1070_v39  ;;  %v1073_v45 = vadd.f32 %v1072_v43, %v1044_v37 }
 0xe93   :  { %v1083_v46 = vmul.f32 0.7978846, %v1081_v44  ;;  %v1076_v55 = vmul.f32 %v1073_v45, %v1073_v45 }
 0xe95   :  { %1465 = vtanh.f32 %v1083_v46  ;;  %v1078_v47 = vmul.f32 %v1076_v55, %v1073_v45 }
 0xe97   :  { %v1080_v49 = vmul.f32 0.044715, %v1078_v47 }
 0xe99   :  { %v1082_v50 = vadd.f32 %v1080_v49, %v1073_v45  ;;  %v1237_v49 = vld [vmem:[#allocation2] sm:$0x1] }
 0xe9b   :  { %v1466_v62 = vpop.eup %1465  ;;  %v1084_v19 = vmul.f32 0.7978846, %v1082_v50  ;;  %v1591_v50 = vmov 0  }
 0xe9c   :  { %v1087_v51 = vadd.f32 1.0, %v1466_v62  ;;  %1394 = vset.pattern.permute.xlu2 %v1591_v50  ;;  %1395 = vset.pattern.permute.xlu0 %v1591_v50  ;;  %v1410_v62 = vld [vmem:[#allocation3 + $0x2] ss:$0 sm:$0xff] }
 0xe9d   :  { %1467 = vtanh.f32 %v1084_v19 }
 0xe9e   :  { %v1089_v52 = vmul.f32 0.5, %v1087_v51 }
 0xea0   :  { %v1091_v54 = vmul.f32 %v1089_v52, %v1070_v39 }
 0xea2   :  { %1349 = vmatmul.msk.f32.vlgmr.msra.gmra.mxu3 %vm583_vm15, %v1091_v54  ;;  %v1236_v54 = vld [vmem:[#allocation3 + $0x3] sm:$0x1] }
 0xea3   :  { %v1468_v2 = vpop.eup %1467 }
 0xea4   :  { %v1088_v24 = vadd.f32 1.0, %v1468_v2 }
 0xea6   :  { %v1090_v57 = vmul.f32 0.5, %v1088_v24 }
 0xea8   :  { %v1092_v58 = vmul.f32 %v1090_v57, %v1073_v45 }
 0xeaa   :  { %1350 = vmatmul.msk.f32.gmra.mxu3 %vm583_vm15, %v1092_v58 }
 0xf25   :  { %v1130_v60 = vpop.f32.mrf.mxu3 }
 0xf26   :  { %v1131_v61 = vadd.f32 %v1407_v59, %v1130_v60 }
 0xf28   :  { %v1136_v63 = vadd.f32 %v1131_v61, %v1032_v21  ;;  %v1351_v21 = vld [vmem:[%s1966_s4 + $0x40] sm:$0xff]  ;;  %s1592_s4 = smov [#allocation9]  }
 0xf29   :  { %1229 = vmatpush.msra.mxu0 %v1351_v21  ;;  %s1277_s5 = sshll.u32 %s1592_s4, 4  ;;  %s1278_s5 = int_to_ptr.vmem [resolvable:$true] %s1277_s5 }
 0xf2a   :  { %v1142_v0 = vsel %vm90_vm0, %v1136_v63, 0.0 }
 0xf2b   :  { %1143 = vadd.xlane.f32.xlu1 %v1142_v0 }
 0xf2d   :  { %v1133_v1 = vpop.f32.mrf.mxu3 }
 0xf2e   :  { %v1134_v26 = vadd.f32 %v1407_v59, %v1133_v1 }
 0xf30   :  { %v1137_v3 = vadd.f32 %v1134_v26, %v1033_v28 }
 0xf32   :  { %v1145_v4 = vsel %vm90_vm0, %v1137_v3, 0.0 }
 0xf33   :  { %1146 = vadd.xlane.f32.xlu0 %v1145_v4 }
 0xf9e   :  { %v1144_v5 = vpop.xlane.xlu1 %1143 }
 0xf9f   :  { %v1148_v8 = vmul.f32 %v1144_v5, %v1668_v11 }
 0xfa1   :  { %v1150_v12 = vsub.f32 %v1136_v63, %v1148_v8 }
 0xfa3   :  { %v1152_v25 = vmul.f32 %v1150_v12, %v1150_v12 }
 0xfa5   :  { %v1154_v14 = vsel %vm90_vm0, %v1152_v25, 0.0 }
 0xfa6   :  { %v1147_v6 = vpop.xlane.xlu0 %1146 }
 0xfa7   :  { %v1149_v7 = vmul.f32 %v1147_v6, %v1668_v11 }
 0xfa9   :  { %v1151_v9 = vsub.f32 %v1137_v3, %v1149_v7 }
 0xfab   :  { %v1153_v10 = vmul.f32 %v1151_v9, %v1151_v9 }
 0xfad   :  { %v1157_v13 = vsel %vm90_vm0, %v1153_v10, 0.0 }
 0xfae   :  { %1158 = vadd.xlane.f32.xlu2 %v1157_v13 }
 0xfb6   :  { %1155 = vadd.xlane.f32.xlu2 %v1154_v14 }
 0xfce   :  { %1240 = vperm.xlu2 %1394, %v1237_v49  }
0x1021   :  { %v1159_v16 = vpop.xlane.xlu2 %1158 }
0x1022   :  { %v1161_v18 = vmul.f32 %v1159_v16, %v1668_v11 }
0x1024   :  { %v1163_v22 = vadd.f32 1e-05, %v1161_v18 }
0x1026   :  { %1469 = vrsqrt.f32 %v1163_v22  ;;  %vm1180_vm14 = vweird.f32 %v1163_v22 }
0x1029   :  { %v1156_v23 = vpop.xlane.xlu2 %1155 }
0x102a   :  { %v1160_v48 = vmul.f32 %v1156_v23, %v1668_v11 }
0x102c   :  { %v1470_v27 = vpop.eup %1469  ;;  %v1162_v28 = vadd.f32 1e-05, %v1160_v48 }
0x102d   :  { %v1175_v53 = vmul.f32 %v1470_v27, %v1163_v22  ;;  %vm1181_vm13 = vweird.f32 %v1470_v27 }
0x102e   :  { %1471 = vrsqrt.f32 %v1162_v28  ;;  %vm1182_vm15 = vmor %vm1180_vm14, %vm1181_vm13  ;;  %vm1170_vm2 = vweird.f32 %v1162_v28 }
0x102f   :  { %v1176_v29 = vmul.f32 %v1470_v27, %v1175_v53 }
0x1031   :  { %v1177_v30 = vmul.f32 0.5, %v1176_v29  ;;  %v1241_v2 = vpop.permute.xlu2 %1240 }
0x1032   :  { %v1243_v24 = vperm.slane %v1241_v2, 0 }
0x1033   :  { %v1178_v31 = vsub.f32 1.5, %v1177_v30 }
0x1034   :  { %v1472_v32 = vpop.eup %1471 }
0x1035   :  { %v1179_v33 = vmul.f32 %v1470_v27, %v1178_v31  ;;  %v1165_v34 = vmul.f32 %v1472_v32, %v1162_v28  ;;  %vm1171_vm1 = vweird.f32 %v1472_v32 }
0x1036   :  { %vm1172_vm3 = vmor %vm1170_vm2, %vm1171_vm1 }
0x1037   :  { %v1183_v35 = vsel %vm1182_vm15, %v1470_v27, %v1179_v33  ;;  %v1166_v36 = vmul.f32 %v1472_v32, %v1165_v34 }
0x1038   :  { %v1185_v37 = vmul.f32 %v1183_v35, %v1151_v9 }
0x1039   :  { %v1167_v38 = vmul.f32 0.5, %v1166_v36 }
0x103a   :  { %v1190_v11 = vmul.f32 %v1408_v56, %v1185_v37 }
0x103b   :  { %v1168_v39 = vsub.f32 1.5, %v1167_v38 }
0x103c   :  { %v1195_v44 = vadd.f32 %v1409_v40, %v1190_v11 }
0x103d   :  { %v1169_v41 = vmul.f32 %v1472_v32, %v1168_v39 }
0x103e   :  { %v1197_v55 = vrot.slane %v1195_v44, 7 }
0x103f   :  { %v1173_v42 = vsel %vm1172_vm3, %v1472_v32, %v1169_v41 }
0x1040   :  { %v1184_v43 = vmul.f32 %v1173_v42, %v1150_v12 }
0x1042   :  { %v1189_v45 = vmul.f32 %v1408_v56, %v1184_v43 }
0x1044   :  { %v1194_v46 = vadd.f32 %v1409_v40, %v1189_v45 }
0x1046   :  { %v1200_v47 = vsel %vm1199_vm4, %v1194_v46, %v1197_v55 }
0x1047   :  { %1355 = vmatmul.msk.f32.vlgmr.msra.gmra.mxu0 %vm90_vm0, %v1200_v47 }
0x10c4   :  { %v1231_v19 = vpop.f32.mrf.mxu0 }
0x10c5   :  { %v1232_v51 = vadd.f32 %v1410_v62, %v1231_v19 }
0x10c7   :  { %1473 = vtanh.f32 %v1232_v51 }
0x10cd   :  { %v1474_v52 = vpop.eup %1473 }
0x10ce   :  { %1356 = vmatpush.xpose.msk.msra.mxu1 %vm90_vm0, %v1474_v52 }
0x10d1   :  { %1357 = vmatmul.msk.f32.vlgmr.msra.gmra.mxu1 %vm90_vm0, %v1236_v54 }
0x114e   :  { %v1267_v57 = vpop.f32.mrf.mxu1 }
0x114f   :  { %v1268_v58 = vadd.f32 %v1267_v57, %v1243_v24 }
0x1151   :  { %1271 = vst.msk [vmem:[#allocation9] sm:$0x1] %vm1270_vm5, %v1268_v58 }
0x1152   :  { %1282 = dma.vmem_to_hbm [thread:$0]  %s1278_s5, 16, %s1280_s20, [#allocation5]  }
0x1153   :  { %1575 = dma.done.wait [#allocation5], 16  }
0x1154   :  { %1576 = vsyncadd [#allocation5], 4294967280 }
0x1155   :  { %1287 = vsyncpa [#allocation4], 1 }
0x1156   :  { %1288 = vsyncpa [#allocation7], 1 }
0x1157   :  { %1289 = vsyncpa [#allocation5], 1 }

</bundles_post_ra>
